<compile_context>
chip_gen: v6e
topology: v6e:2x2x1
jax: 0.10.0
libtpu: 0.0.40
codegen_flags: <defaults>
</compile_context>

<pallas_src>
import functools
import math

import jax
import jax.numpy as jnp
from jax.experimental import pallas as pl
from jax.experimental.pallas import tpu as pltpu


MAX_ROW_TILE = 256  # 256-512 recommended; 256 keeps >=2 grid steps sooner for v7x's 2 TCs.


# ----------------------------------------------------------------------------- helpers
def _row_tiling(m, max_tm=MAX_ROW_TILE):
    """Pick (tile_rows, padded_rows).  Small inputs use a single whole-array block
    (no padding copy); large inputs use big MXU-friendly tiles."""
    if m <= max_tm:
        return m, m
    tm = max_tm
    return tm, pl.cdiv(m, tm) * tm


def _vmem_limit(*byte_terms):
    """Raise the scoped-VMEM limit to cover resident operands (+margin), but stay
    below v7x's 64 MiB physical VMEM."""
    needed = int(sum(byte_terms)) + (4 << 20)
    return int(min(max(needed, 32 << 20), 60 << 20))


# ----------------------------------------------------------------------------- kernels
def _dense_kernel(x_ref, w_ref, b_ref, o_ref, *, relu, mxu_dtype):
    x = x_ref[...].astype(mxu_dtype)
    w = w_ref[...].astype(mxu_dtype)
    y = jnp.dot(x, w, preferred_element_type=jnp.float32)
    y = y + b_ref[...].astype(jnp.float32)
    if relu:
        y = jnp.maximum(y, 0.0)
    o_ref[...] = y.astype(o_ref.dtype)


def _ffn_kernel(x_ref, w1_ref, b1_ref, w2_ref, b2_ref, o_ref, *, mxu_dtype):
    x = x_ref[...].astype(mxu_dtype)
    h = jnp.dot(x, w1_ref[...].astype(mxu_dtype), preferred_element_type=jnp.float32)
    h = h + b1_ref[...].astype(jnp.float32)
    h = jnp.maximum(h, 0.0)                                   # ReLU in f32
    y = jnp.dot(h.astype(mxu_dtype), w2_ref[...].astype(mxu_dtype),
                preferred_element_type=jnp.float32)
    y = y + b2_ref[...].astype(jnp.float32)
    o_ref[...] = y.astype(o_ref.dtype)


def _add_ln_kernel(x_ref, r_ref, g_ref, b_ref, o_ref, *, eps):
    x = x_ref[...].astype(jnp.float32) + r_ref[...].astype(jnp.float32)
    mu = jnp.mean(x, axis=-1, keepdims=True)
    xc = x - mu
    var = jnp.mean(xc * xc, axis=-1, keepdims=True)
    inv = jax.lax.rsqrt(var + eps)
    y = xc * inv * g_ref[...].astype(jnp.float32) + b_ref[...].astype(jnp.float32)
    o_ref[...] = y.astype(o_ref.dtype)


def _attn_kernel(q_ref, k_ref, v_ref, bias_ref, o_ref, score_ref, *, sm_scale, mxu_dtype):
    q = q_ref[0].astype(mxu_dtype)
    k = k_ref[0].astype(mxu_dtype)
    scores = jnp.dot(q, k.T, preferred_element_type=jnp.float32) * sm_scale
    score_ref[0] = scores                     # pre-mask scores (== self.score in torch)
    s = scores + bias_ref[0]
    m = jnp.max(s, axis=-1, keepdims=True)
    p = jnp.exp(s - m)
    p = p / jnp.sum(p, axis=-1, keepdims=True)
    out = jnp.dot(p.astype(mxu_dtype), v_ref[0].astype(mxu_dtype),
                  preferred_element_type=jnp.float32)
    o_ref[0] = out.astype(o_ref.dtype)


# ----------------------------------------------------------------------------- wrappers
def dense(x, w, b, *, relu=False, mxu_dtype=jnp.float32, max_tm=MAX_ROW_TILE):
    """y = x @ w + b (optionally ReLU) over the last dim of x."""
    orig_shape = x.shape
    k_dim = orig_shape[-1]
    n_dim = w.shape[1]
    x2d = x.reshape(-1, k_dim)
    m = x2d.shape[0]
    tm, m_pad = _row_tiling(m, max_tm)
    if m_pad != m:   # only for large ragged row counts; small inputs never pad
        x2d = jnp.pad(x2d, ((0, m_pad - m), (0, 0)))
    b2d = b.reshape(1, n_dim)

    w_bytes = 4 * (k_dim * n_dim + n_dim)
    vmem_limit = _vmem_limit(2 * 4 * tm * k_dim, 2 * 4 * tm * n_dim, 2 * w_bytes)
    cost = pl.CostEstimate(
        flops=2 * m_pad * k_dim * n_dim,
        transcendentals=0,
        bytes_accessed=4 * (m_pad * k_dim + m_pad * n_dim) + w_bytes)

    kernel = functools.partial(_dense_kernel, relu=relu, mxu_dtype=mxu_dtype)
    out = pl.pallas_call(
        kernel,
        out_shape=jax.ShapeDtypeStruct((m_pad, n_dim), x.dtype),
        grid_spec=pltpu.PrefetchScalarGridSpec(
            num_scalar_prefetch=0,
            grid=(m_pad // tm,),
            in_specs=[
                pl.BlockSpec((tm, k_dim), lambda i: (i, 0)),
                # TODO(synk): pipeline_mode=pl.Buffered(1) on these constant-index
                # weight/bias specs would halve their VMEM footprint.
                pl.BlockSpec((k_dim, n_dim), lambda i: (0, 0)),
                pl.BlockSpec((1, n_dim), lambda i: (0, 0)),
            ],
            out_specs=pl.BlockSpec((tm, n_dim), lambda i: (i, 0)),
        ),
        compiler_params=pltpu.CompilerParams(
            dimension_semantics=("parallel",),
            vmem_limit_bytes=vmem_limit),
        cost_estimate=cost,
    )(x2d, w, b2d)
    if m_pad != m:
        out = out[:m]
    return out.reshape(orig_shape[:-1] + (n_dim,))


def feed_forward(x, w1, b1, w2, b2, *, mxu_dtype=jnp.float32, max_tm=MAX_ROW_TILE):
    """Fused Linear -> ReLU -> Linear (the FeedForward block)."""
    orig_shape = x.shape
    d_model = orig_shape[-1]
    d_hidden = w1.shape[1]
    x2d = x.reshape(-1, d_model)
    m = x2d.shape[0]
    tm, m_pad = _row_tiling(m, max_tm)
    if m_pad != m:
        x2d = jnp.pad(x2d, ((0, m_pad - m), (0, 0)))
    b1_2d = b1.reshape(1, d_hidden)
    b2_2d = b2.reshape(1, d_model)

    w_bytes = 4 * (2 * d_model * d_hidden + d_hidden + d_model)
    vmem_limit = _vmem_limit(4 * 4 * tm * d_model,      # in + out tiles, double-buffered
                             2 * w_bytes,               # resident weights (default 2x buffers)
                             4 * tm * d_hidden)         # ReLU intermediate
    cost = pl.CostEstimate(
        flops=4 * m_pad * d_model * d_hidden,
        transcendentals=0,
        bytes_accessed=4 * 2 * m_pad * d_model + w_bytes)

    kernel = functools.partial(_ffn_kernel, mxu_dtype=mxu_dtype)
    out = pl.pallas_call(
        kernel,
        out_shape=jax.ShapeDtypeStruct((m_pad, d_model), x.dtype),
        grid_spec=pltpu.PrefetchScalarGridSpec(
            num_scalar_prefetch=0,
            grid=(m_pad // tm,),
            in_specs=[
                pl.BlockSpec((tm, d_model), lambda i: (i, 0)),
                pl.BlockSpec((d_model, d_hidden), lambda i: (0, 0)),
                pl.BlockSpec((1, d_hidden), lambda i: (0, 0)),
                pl.BlockSpec((d_hidden, d_model), lambda i: (0, 0)),
                pl.BlockSpec((1, d_model), lambda i: (0, 0)),
            ],
            out_specs=pl.BlockSpec((tm, d_model), lambda i: (i, 0)),
        ),
        compiler_params=pltpu.CompilerParams(
            dimension_semantics=("parallel",),
            vmem_limit_bytes=vmem_limit),
        cost_estimate=cost,
    )(x2d, w1, b1_2d, w2, b2_2d)
    if m_pad != m:
        out = out[:m]
    return out.reshape(orig_shape)


def add_layer_norm(x, residual, gamma, beta, *, eps=1e-5, max_tm=MAX_ROW_TILE):
    """LayerNorm(x + residual) with learnable gamma/beta (torch defaults, eps=1e-5)."""
    orig_shape = x.shape
    d = orig_shape[-1]
    x2d = x.reshape(-1, d)
    r2d = residual.reshape(-1, d)
    m = x2d.shape[0]
    tm, m_pad = _row_tiling(m, max_tm)
    if m_pad != m:
        x2d = jnp.pad(x2d, ((0, m_pad - m), (0, 0)))
        r2d = jnp.pad(r2d, ((0, m_pad - m), (0, 0)))
    g2d = gamma.reshape(1, d)
    b2d = beta.reshape(1, d)

    kernel = functools.partial(_add_ln_kernel, eps=eps)
    out = pl.pallas_call(
        kernel,
        out_shape=jax.ShapeDtypeStruct((m_pad, d), x.dtype),
        grid_spec=pltpu.PrefetchScalarGridSpec(
            num_scalar_prefetch=0,
            grid=(m_pad // tm,),
            in_specs=[
                pl.BlockSpec((tm, d), lambda i: (i, 0)),
                pl.BlockSpec((tm, d), lambda i: (i, 0)),
                pl.BlockSpec((1, d), lambda i: (0, 0)),
                pl.BlockSpec((1, d), lambda i: (0, 0)),
            ],
            out_specs=pl.BlockSpec((tm, d), lambda i: (i, 0)),
        ),
        compiler_params=pltpu.CompilerParams(
            dimension_semantics=("parallel",),
            vmem_limit_bytes=_vmem_limit(6 * 4 * tm * d)),
        cost_estimate=pl.CostEstimate(flops=10 * m_pad * d, transcendentals=m_pad,
                                      bytes_accessed=4 * 3 * m_pad * d),
    )(x2d, r2d, g2d, b2d)
    if m_pad != m:
        out = out[:m]
    return out.reshape(orig_shape)


def _attention_call(Q, K, V, bias, *, sm_scale, mxu_dtype):
    """Per batch-head softmax attention. Q/K: (BH,S,dq), V: (BH,S,dv), bias: (BH,S,S)."""
    BH, S, dq = Q.shape
    dv = V.shape[-1]
    kernel = functools.partial(_attn_kernel, sm_scale=sm_scale, mxu_dtype=mxu_dtype)
    cost = pl.CostEstimate(
        flops=2 * BH * S * S * (dq + dv),
        transcendentals=BH * S * S,
        bytes_accessed=4 * (BH * S * (2 * dq + 2 * dv) + 2 * BH * S * S))
    out, score = pl.pallas_call(
        kernel,
        out_shape=(jax.ShapeDtypeStruct((BH, S, dv), Q.dtype),
                   jax.ShapeDtypeStruct((BH, S, S), jnp.float32)),
        grid_spec=pltpu.PrefetchScalarGridSpec(
            num_scalar_prefetch=0,
            grid=(BH,),
            in_specs=[
                pl.BlockSpec((1, S, dq), lambda i: (i, 0, 0)),
                pl.BlockSpec((1, S, dq), lambda i: (i, 0, 0)),
                pl.BlockSpec((1, S, dv), lambda i: (i, 0, 0)),
                pl.BlockSpec((1, S, S), lambda i: (i, 0, 0)),
            ],
            out_specs=[pl.BlockSpec((1, S, dv), lambda i: (i, 0, 0)),
                       pl.BlockSpec((1, S, S), lambda i: (i, 0, 0))],
        ),
        compiler_params=pltpu.CompilerParams(
            dimension_semantics=("parallel",),
            vmem_limit_bytes=_vmem_limit(2 * 4 * S * (2 * dq + 2 * dv + 2 * S))),
        cost_estimate=cost,
    )(Q, K, V, bias)
    return out, score


# ----------------------------------------------------------------------------- model
def _positional_encoding(d_input, d_model):
    pe = jnp.ones((d_input, d_model), jnp.float32)
    position = jnp.arange(d_input, dtype=jnp.float32)[:, None]
    temp = jnp.arange(0, d_model, 2, dtype=jnp.float32) * (-(math.log(10000.0) / d_model))
    angles = position @ jnp.exp(temp)[None, :]
    pe = pe.at[:, 0::2].set(jnp.sin(angles))
    pe = pe.at[:, 1::2].set(jnp.cos(angles))
    return pe


def multi_head_attention(ep, x, *, stage, padding_mask, causal, h, dq, dv, mxu_dtype):
    B, S, _ = x.shape
    qf = dense(x, ep["wq_w"], ep["wq_b"], mxu_dtype=mxu_dtype)
    kf = dense(x, ep["wk_w"], ep["wk_b"], mxu_dtype=mxu_dtype)
    vf = dense(x, ep["wv_w"], ep["wv_b"], mxu_dtype=mxu_dtype)

    def to_heads(t, d):
        # torch.cat(t.chunk(h, dim=-1), dim=0) -> head-major stacking on the batch axis
        return jnp.transpose(t.reshape(B, S, h, d), (2, 0, 1, 3)).reshape(h * B, S, d)

    Q, K, V = to_heads(qf, dq), to_heads(kf, dq), to_heads(vf, dv)

    bias = jnp.zeros((h * B, S, S), jnp.float32)
    if causal and stage == "train":
        tril = jnp.tril(jnp.ones((S, S), jnp.float32))
        bias = bias + jnp.where(tril > 0, 0.0, float(-(2 ** 32) + 1))[None, :, :]
    if padding_mask is not None:
        pm = padding_mask.astype(jnp.float32)
        pad_bias = jnp.where(pm == 0, -jnp.inf, 1.0)   # matches torch masked_fill + add
        bias = bias + jnp.tile(pad_bias[:, None, :], (h, 1, 1))

    attn, score = _attention_call(Q, K, V, bias, sm_scale=1.0 / math.sqrt(dq),
                                  mxu_dtype=mxu_dtype)
    # torch.cat(attention.chunk(h, dim=0), dim=-1)
    attn = jnp.transpose(attn.reshape(h, B, S, dv), (1, 2, 0, 3)).reshape(B, S, h * dv)
    out = dense(attn, ep["wo_w"], ep["wo_b"], mxu_dtype=mxu_dtype)
    return out, score


def encoder_forward(ep, x, *, stage, padding_mask, causal, h, dq, dv, mxu_dtype):
    residual = x
    attn, score = multi_head_attention(ep, x, stage=stage, padding_mask=padding_mask,
                                       causal=causal, h=h, dq=dq, dv=dv, mxu_dtype=mxu_dtype)
    # TODO(synk): nn.Dropout omitted (eval-mode identity semantics).
    x = add_layer_norm(attn, residual, ep["ln1_g"], ep["ln1_b"])
    residual = x
    x = feed_forward(x, ep["ffn_w1"], ep["ffn_b1"], ep["ffn_w2"], ep["ffn_b2"],
                     mxu_dtype=mxu_dtype)
    x = add_layer_norm(x, residual, ep["ln2_g"], ep["ln2_b"])
    return x, score


def mgtn_forward(params, x, padding_mask=None, *, cfg, stage="test", mxu_dtype=jnp.float32):
    B, d_input, d_channel = x.shape
    d_model, h, dq, dv = cfg["d_model"], cfg["h"], cfg["q"], cfg["v"]

    encoding_1 = dense(x, params["emb_ch_w"], params["emb_ch_b"], mxu_dtype=mxu_dtype)
    input_to_gather = encoding_1
    if cfg["pe"]:
        encoding_1 = encoding_1 + _positional_encoding(d_input, d_model)[None, :, :]

    score_input = None
    for ep in params["encoders_1"]:
        encoding_1, score_input = encoder_forward(
            ep, encoding_1, stage=stage, padding_mask=padding_mask,
            causal=cfg["mask"], h=h, dq=dq, dv=dv, mxu_dtype=mxu_dtype)

    encoding_2 = dense(jnp.swapaxes(x, -1, -2), params["emb_in_w"], params["emb_in_b"],
                       mxu_dtype=mxu_dtype)
    channel_to_gather = encoding_2
    score_channel = None
    for ep in params["encoders_2"]:
        encoding_2, score_channel = encoder_forward(
            ep, encoding_2, stage=stage, padding_mask=None,
            causal=cfg["mask"], h=h, dq=dq, dv=dv, mxu_dtype=mxu_dtype)

    e1 = encoding_1.reshape(B, -1)
    e2 = encoding_2.reshape(B, -1)
    gate_logits = dense(jnp.concatenate([e1, e2], axis=-1),
                        params["gate_w"], params["gate_b"], mxu_dtype=mxu_dtype)
    gate = jax.nn.softmax(gate_logits, axis=-1)             # tiny (B, 2)
    encoding = jnp.concatenate([e1 * gate[:, 0:1], e2 * gate[:, 1:2]], axis=-1)
    output = dense(encoding, params["out_w"], params["out_b"], mxu_dtype=mxu_dtype)
    return (output, encoding, score_input, score_channel,
            input_to_gather, channel_to_gather, gate)


# ----------------------------------------------------------------------------- init
def _linear_init(key, fan_in, fan_out):
    """nn.Linear init: U(-1/sqrt(fan_in), 1/sqrt(fan_in)); weight stored (in, out)."""
    kw, kb = jax.random.split(key)
    bound = 1.0 / math.sqrt(fan_in)
    w = jax.random.uniform(kw, (fan_in, fan_out), jnp.float32, -bound, bound)
    b = jax.random.uniform(kb, (fan_out,), jnp.float32, -bound, bound)
    return w, b


def init_mgtn_params(key, cfg):
    d_model, d_input, d_channel = cfg["d_model"], cfg["d_input"], cfg["d_channel"]
    d_hidden, d_output = cfg["d_hidden"], cfg["d_output"]
    q, v, h, N = cfg["q"], cfg["v"], cfg["h"], cfg["N"]
    keys = iter(jax.random.split(key, 64))
    nk = lambda: next(keys)

    def enc():
        wq_w, wq_b = _linear_init(nk(), d_model, q * h)
        wk_w, wk_b = _linear_init(nk(), d_model, q * h)
        wv_w, wv_b = _linear_init(nk(), d_model, v * h)
        wo_w, wo_b = _linear_init(nk(), v * h, d_model)
        f1_w, f1_b = _linear_init(nk(), d_model, d_hidden)
        f2_w, f2_b = _linear_init(nk(), d_hidden, d_model)
        return dict(
            wq_w=wq_w, wq_b=wq_b, wk_w=wk_w, wk_b=wk_b, wv_w=wv_w, wv_b=wv_b,
            wo_w=wo_w, wo_b=wo_b,
            ffn_w1=f1_w, ffn_b1=f1_b, ffn_w2=f2_w, ffn_b2=f2_b,
            ln1_g=jnp.ones((d_model,), jnp.float32), ln1_b=jnp.zeros((d_model,), jnp.float32),
            ln2_g=jnp.ones((d_model,), jnp.float32), ln2_b=jnp.zeros((d_model,), jnp.float32))

    emb_ch_w, emb_ch_b = _linear_init(nk(), d_channel, d_model)
    emb_in_w, emb_in_b = _linear_init(nk(), d_input, d_model)
    d_flat = d_model * d_input + d_model * d_channel
    gate_w, gate_b = _linear_init(nk(), d_flat, 2)
    out_w, out_b = _linear_init(nk(), d_flat, d_output)
    return dict(emb_ch_w=emb_ch_w, emb_ch_b=emb_ch_b,
                emb_in_w=emb_in_w, emb_in_b=emb_in_b,
                gate_w=gate_w, gate_b=gate_b, out_w=out_w, out_b=out_b,
                encoders_1=[enc() for _ in range(N)],
                encoders_2=[enc() for _ in range(N)])


# ----------------------------------------------------------------------------- reference
def _reference_forward(params, x, padding_mask, *, cfg, stage):
    """Pure-JAX replica of the PyTorch forward (dropout = identity)."""
    d_model, d_input = cfg["d_model"], cfg["d_input"]
    h, dq, dv, causal = cfg["h"], cfg["q"], cfg["v"], cfg["mask"]

    def linear(t, w, b):
        return jnp.matmul(t, w) + b

    def layer_norm(t, g, b, eps=1e-5):
        mu = jnp.mean(t, axis=-1, keepdims=True)
        var = jnp.mean((t - mu) ** 2, axis=-1, keepdims=True)
        return (t - mu) / jnp.sqrt(var + eps) * g + b

    def mha(ep, t, padding):
        S = t.shape[1]
        heads = lambda z: jnp.concatenate(jnp.split(z, h, axis=-1), axis=0)
        Q = heads(linear(t, ep["wq_w"], ep["wq_b"]))
        K = heads(linear(t, ep["wk_w"], ep["wk_b"]))
        V = heads(linear(t, ep["wv_w"], ep["wv_b"]))
        score = jnp.matmul(Q, jnp.swapaxes(K, -1, -2)) / math.sqrt(dq)
        pre = score
        if causal and stage == "train":
            tril = jnp.tril(jnp.ones((S, S), score.dtype))
            score = jnp.where(tril > 0, score, float(-(2 ** 32) + 1))
        if padding is not None:
            me = jnp.where(padding.astype(score.dtype) == 0, -jnp.inf, 1.0)
            score = score + jnp.tile(me[:, None, :], (h, 1, 1))
        score = jax.nn.softmax(score, axis=-1)
        attn = jnp.concatenate(jnp.split(jnp.matmul(score, V), h, axis=0), axis=-1)
        return linear(attn, ep["wo_w"], ep["wo_b"]), pre

    def encoder(ep, t, padding):
        res = t
        a, sc = mha(ep, t, padding)
        t = layer_norm(a + res, ep["ln1_g"], ep["ln1_b"])
        res = t
        f = linear(jax.nn.relu(linear(t, ep["ffn_w1"], ep["ffn_b1"])),
                   ep["ffn_w2"], ep["ffn_b2"])
        return layer_norm(f + res, ep["ln2_g"], ep["ln2_b"]), sc

    e1 = linear(x, params["emb_ch_w"], params["emb_ch_b"])
    input_to_gather = e1
    if cfg["pe"]:
        e1 = e1 + _positional_encoding(d_input, d_model)[None, :, :]
    sc_in = None
    for ep in params["encoders_1"]:
        e1, sc_in = encoder(ep, e1, padding_mask)
    e2 = linear(jnp.swapaxes(x, -1, -2), params["emb_in_w"], params["emb_in_b"])
    channel_to_gather = e2
    sc_ch = None
    for ep in params["encoders_2"]:
        e2, sc_ch = encoder(ep, e2, None)
    B = x.shape[0]
    e1f, e2f = e1.reshape(B, -1), e2.reshape(B, -1)
    gate = jax.nn.softmax(linear(jnp.concatenate([e1f, e2f], -1),
                                 params["gate_w"], params["gate_b"]), axis=-1)
    encoding = jnp.concatenate([e1f * gate[:, 0:1], e2f * gate[:, 1:2]], axis=-1)
    output = linear(encoding, params["out_w"], params["out_b"])
    return output, encoding, sc_in, sc_ch, input_to_gather, channel_to_gather, gate


# ----------------------------------------------------------------------------- demo
def _assert_close(name, got, want, atol=1e-3, rtol=1e-3):
    got, want = jnp.asarray(got), jnp.asarray(want)
    assert got.shape == want.shape, f"{name}: shape {got.shape} vs {want.shape}"
    if not bool(jnp.allclose(got, want, atol=atol, rtol=rtol)):
        raise AssertionError(f"{name}: max abs diff {float(jnp.max(jnp.abs(got - want)))}")


if __name__ == "__main__":
    cfg = dict(d_model=32, d_input=16, d_channel=8, d_output=4, d_hidden=64,
               q=8, v=8, h=4, N=2, pe=True, mask=True)
    B = 2

    key = jax.random.PRNGKey(0)
    kx, kp = jax.random.split(key)
    x = jax.random.normal(kx, (B, cfg["d_input"], cfg["d_channel"]), jnp.float32)
    padding_mask = jnp.ones((B, cfg["d_input"]), jnp.float32).at[1, -3:].set(0.0)
    params = init_mgtn_params(kp, cfg)

    fwd = jax.jit(functools.partial(mgtn_forward, cfg=cfg, stage="train",
                                    mxu_dtype=jnp.float32))
    outs = jax.block_until_ready(fwd(params, x, padding_mask))
    output, encoding, score_in, score_ch, in_gather, ch_gather, gate = outs

    ref = _reference_forward(params, x, padding_mask, cfg=cfg, stage="train")
    _assert_close("output", output, ref[0])
    _assert_close("encoding", encoding, ref[1])
    _assert_close("score_input", score_in, ref[2])
    _assert_close("score_channel", score_ch, ref[3])
    _assert_close("input_to_gather", in_gather, ref[4])
    _assert_close("channel_to_gather", ch_gather, ref[5])
    _assert_close("gate", gate, ref[6])

    # bf16-on-MXU path smoke test (f32 accumulation; no tight tolerance by design).
    fwd_bf16 = jax.jit(functools.partial(mgtn_forward, cfg=cfg, stage="train",
                                         mxu_dtype=jnp.bfloat16))
    out_bf16 = jax.block_until_ready(fwd_bf16(params, x, padding_mask))
    assert bool(jnp.all(jnp.isfinite(out_bf16[0])))

    print("KERNEL_OK")
</pallas_src>

<mosaic_0001>
module attributes {stable_mosaic.version = 11 : i64} {
  func.func @_dense_kernel(%arg0: i32, %arg1: memref<32x8xf32, #tpu.memory_space<vmem>>, %arg2: memref<8x32xf32, #tpu.memory_space<vmem>>, %arg3: memref<1x32xf32, #tpu.memory_space<vmem>>, %arg4: memref<32x32xf32, #tpu.memory_space<vmem>>) attributes {dimension_semantics = [#tpu.dimension_semantics<parallel>], iteration_bounds = array<i64: 1>, scalar_prefetch = 0 : i64, scratch_operands = 0 : i64, tpu.core_type = #tpu.core_type<tc>, window_params = [{transform_indices = @transform_0, window_bounds = array<i64: 32, 8>}, {pipeline_mode = #tpu.pipeline_mode<synchronous>, transform_indices = @transform_1, window_bounds = array<i64: 8, 32>}, {pipeline_mode = #tpu.pipeline_mode<synchronous>, transform_indices = @transform_2, window_bounds = array<i64: 1, 32>}, {transform_indices = @transform_3, window_bounds = array<i64: 32, 32>}]} {
    %c0 = arith.constant 0 : index
    %c0_0 = arith.constant 0 : index
    %0 = vector.load %arg1[%c0, %c0_0] : memref<32x8xf32, #tpu.memory_space<vmem>>, vector<32x8xf32>
    %c0_1 = arith.constant 0 : index
    %c0_2 = arith.constant 0 : index
    %1 = vector.load %arg2[%c0_1, %c0_2] : memref<8x32xf32, #tpu.memory_space<vmem>>, vector<8x32xf32>
    %cst = arith.constant dense<0.000000e+00> : vector<32x32xf32>
    %2 = tpu.matmul %0, %1, %cst {dimension_numbers = #tpu.dot_dimension_numbers<[1], [0], [0], [1], [0, 0, 1, 1], [], []>} : vector<32x8xf32>, vector<8x32xf32>, vector<32x32xf32> -> vector<32x32xf32>
    %c0_3 = arith.constant 0 : index
    %c0_4 = arith.constant 0 : index
    %3 = vector.load %arg3[%c0_3, %c0_4] : memref<1x32xf32, #tpu.memory_space<vmem>>, vector<1x32xf32>
    %4 = vector.broadcast %3 : vector<1x32xf32> to vector<32x32xf32>
    %5 = arith.addf %2, %4 : vector<32x32xf32>
    %c0_5 = arith.constant 0 : index
    %c0_6 = arith.constant 0 : index
    %6 = vector.load %arg4[%c0_5, %c0_6] : memref<32x32xf32, #tpu.memory_space<vmem>>, vector<32x32xf32>
    tpu.vector_store %arg4[%c0_5, %c0_6], %5 {strides = array<i32>} : memref<32x32xf32, #tpu.memory_space<vmem>>, vector<32x32xf32>,
    return
  }
  func.func @transform_0(%arg0: i32) -> (i32, i32) {
    %c0_i32 = arith.constant 0 : i32
    %c0_i32_0 = arith.constant 0 : i32
    return %arg0, %c0_i32 : i32, i32
  }
  func.func @transform_1(%arg0: i32) -> (i32, i32) {
    %c0_i32 = arith.constant 0 : i32
    %c0_i32_0 = arith.constant 0 : i32
    %c0_i32_1 = arith.constant 0 : i32
    return %c0_i32, %c0_i32_0 : i32, i32
  }
  func.func @transform_2(%arg0: i32) -> (i32, i32) {
    %c0_i32 = arith.constant 0 : i32
    %c0_i32_0 = arith.constant 0 : i32
    %c0_i32_1 = arith.constant 0 : i32
    return %c0_i32, %c0_i32_0 : i32, i32
  }
  func.func @transform_3(%arg0: i32) -> (i32, i32) {
    %c0_i32 = arith.constant 0 : i32
    %c0_i32_0 = arith.constant 0 : i32
    return %arg0, %c0_i32 : i32, i32
  }
}

module attributes {stable_mosaic.version = 11 : i64} {
  func.func @_dense_kernel(%arg0: i32, %arg1: memref<32x32xf32, #tpu.memory_space<vmem>>, %arg2: memref<32x32xf32, #tpu.memory_space<vmem>>, %arg3: memref<1x32xf32, #tpu.memory_space<vmem>>, %arg4: memref<32x32xf32, #tpu.memory_space<vmem>>) attributes {dimension_semantics = [#tpu.dimension_semantics<parallel>], iteration_bounds = array<i64: 1>, scalar_prefetch = 0 : i64, scratch_operands = 0 : i64, tpu.core_type = #tpu.core_type<tc>, window_params = [{transform_indices = @transform_0, window_bounds = array<i64: 32, 32>}, {pipeline_mode = #tpu.pipeline_mode<synchronous>, transform_indices = @transform_1, window_bounds = array<i64: 32, 32>}, {pipeline_mode = #tpu.pipeline_mode<synchronous>, transform_indices = @transform_2, window_bounds = array<i64: 1, 32>}, {transform_indices = @transform_3, window_bounds = array<i64: 32, 32>}]} {
    %c0 = arith.constant 0 : index
    %c0_0 = arith.constant 0 : index
    %0 = vector.load %arg1[%c0, %c0_0] : memref<32x32xf32, #tpu.memory_space<vmem>>, vector<32x32xf32>
    %c0_1 = arith.constant 0 : index
    %c0_2 = arith.constant 0 : index
    %1 = vector.load %arg2[%c0_1, %c0_2] : memref<32x32xf32, #tpu.memory_space<vmem>>, vector<32x32xf32>
    %cst = arith.constant dense<0.000000e+00> : vector<32x32xf32>
    %2 = tpu.matmul %0, %1, %cst {dimension_numbers = #tpu.dot_dimension_numbers<[1], [0], [0], [1], [0, 0, 1, 1], [], []>} : vector<32x32xf32>, vector<32x32xf32>, vector<32x32xf32> -> vector<32x32xf32>
    %c0_3 = arith.constant 0 : index
    %c0_4 = arith.constant 0 : index
    %3 = vector.load %arg3[%c0_3, %c0_4] : memref<1x32xf32, #tpu.memory_space<vmem>>, vector<1x32xf32>
    %4 = vector.broadcast %3 : vector<1x32xf32> to vector<32x32xf32>
    %5 = arith.addf %2, %4 : vector<32x32xf32>
    %c0_5 = arith.constant 0 : index
    %c0_6 = arith.constant 0 : index
    %6 = vector.load %arg4[%c0_5, %c0_6] : memref<32x32xf32, #tpu.memory_space<vmem>>, vector<32x32xf32>
    tpu.vector_store %arg4[%c0_5, %c0_6], %5 {strides = array<i32>} : memref<32x32xf32, #tpu.memory_space<vmem>>, vector<32x32xf32>,
    return
  }
  func.func @transform_0(%arg0: i32) -> (i32, i32) {
    %c0_i32 = arith.constant 0 : i32
    %c0_i32_0 = arith.constant 0 : i32
    return %arg0, %c0_i32 : i32, i32
  }
  func.func @transform_1(%arg0: i32) -> (i32, i32) {
    %c0_i32 = arith.constant 0 : i32
    %c0_i32_0 = arith.constant 0 : i32
    %c0_i32_1 = arith.constant 0 : i32
    return %c0_i32, %c0_i32_0 : i32, i32
  }
  func.func @transform_2(%arg0: i32) -> (i32, i32) {
    %c0_i32 = arith.constant 0 : i32
    %c0_i32_0 = arith.constant 0 : i32
    %c0_i32_1 = arith.constant 0 : i32
    return %c0_i32, %c0_i32_0 : i32, i32
  }
  func.func @transform_3(%arg0: i32) -> (i32, i32) {
    %c0_i32 = arith.constant 0 : i32
    %c0_i32_0 = arith.constant 0 : i32
    return %arg0, %c0_i32 : i32, i32
  }
}

module attributes {stable_mosaic.version = 11 : i64} {
  func.func @_attn_kernel(%arg0: i32, %arg1: memref<1x16x8xf32, #tpu.memory_space<vmem>>, %arg2: memref<1x16x8xf32, #tpu.memory_space<vmem>>, %arg3: memref<1x16x8xf32, #tpu.memory_space<vmem>>, %arg4: memref<1x16x16xf32, #tpu.memory_space<vmem>>, %arg5: memref<1x16x8xf32, #tpu.memory_space<vmem>>, %arg6: memref<1x16x16xf32, #tpu.memory_space<vmem>>) attributes {dimension_semantics = [#tpu.dimension_semantics<parallel>], iteration_bounds = array<i64: 8>, scalar_prefetch = 0 : i64, scratch_operands = 0 : i64, tpu.core_type = #tpu.core_type<tc>, window_params = [{transform_indices = @transform_0, window_bounds = array<i64: 1, 16, 8>}, {transform_indices = @transform_1, window_bounds = array<i64: 1, 16, 8>}, {transform_indices = @transform_2, window_bounds = array<i64: 1, 16, 8>}, {transform_indices = @transform_3, window_bounds = array<i64: 1, 16, 16>}, {transform_indices = @transform_4, window_bounds = array<i64: 1, 16, 8>}, {transform_indices = @transform_5, window_bounds = array<i64: 1, 16, 16>}]} {
    %c0 = arith.constant 0 : index
    %c0_0 = arith.constant 0 : index
    %c0_1 = arith.constant 0 : index
    %0 = vector.load %arg1[%c0, %c0_0, %c0_1] : memref<1x16x8xf32, #tpu.memory_space<vmem>>, vector<1x16x8xf32>
    %1 = vector.shape_cast %0 : vector<1x16x8xf32> to vector<16x8xf32>
    %c0_2 = arith.constant 0 : index
    %c0_3 = arith.constant 0 : index
    %c0_4 = arith.constant 0 : index
    %2 = vector.load %arg2[%c0_2, %c0_3, %c0_4] : memref<1x16x8xf32, #tpu.memory_space<vmem>>, vector<1x16x8xf32>
    %3 = vector.shape_cast %2 : vector<1x16x8xf32> to vector<16x8xf32>
    %4 = tpu.transpose %3, [1, 0] : vector<16x8xf32> -> vector<8x16xf32>
    %cst = arith.constant dense<0.000000e+00> : vector<16x16xf32>
    %5 = tpu.matmul %1, %4, %cst {dimension_numbers = #tpu.dot_dimension_numbers<[1], [0], [0], [1], [0, 0, 1, 1], [], []>} : vector<16x8xf32>, vector<8x16xf32>, vector<16x16xf32> -> vector<16x16xf32>
    %cst_5 = arith.constant 0.353553385 : f32
    %6 = vector.broadcast %cst_5 : f32 to vector<16x16xf32>
    %7 = arith.mulf %5, %6 : vector<16x16xf32>
    %c0_6 = arith.constant 0 : index
    %c0_7 = arith.constant 0 : index
    %c0_8 = arith.constant 0 : index
    %8 = vector.load %arg6[%c0_6, %c0_7, %c0_8] : memref<1x16x16xf32, #tpu.memory_space<vmem>>, vector<1x16x16xf32>
    %9 = vector.shape_cast %8 : vector<1x16x16xf32> to vector<16x16xf32>
    %10 = vector.shape_cast %7 : vector<16x16xf32> to vector<1x16x16xf32>
    tpu.vector_store %arg6[%c0_6, %c0_7, %c0_8], %10 {strides = array<i32>} : memref<1x16x16xf32, #tpu.memory_space<vmem>>, vector<1x16x16xf32>,
    %c0_9 = arith.constant 0 : index
    %c0_10 = arith.constant 0 : index
    %c0_11 = arith.constant 0 : index
    %11 = vector.load %arg4[%c0_9, %c0_10, %c0_11] : memref<1x16x16xf32, #tpu.memory_space<vmem>>, vector<1x16x16xf32>
    %12 = vector.shape_cast %11 : vector<1x16x16xf32> to vector<16x16xf32>
    %13 = arith.addf %7, %12 : vector<16x16xf32>
    %cst_12 = arith.constant dense<0xFF800000> : vector<16xf32>
    %14 = vector.multi_reduction <maximumf>, %13, %cst_12 [1] : vector<16x16xf32> to vector<16xf32>
    %15 = vector.shape_cast %14 : vector<16xf32> to vector<16x1xf32>
    %16 = vector.broadcast %15 : vector<16x1xf32> to vector<16x16xf32>
    %17 = arith.subf %13, %16 : vector<16x16xf32>
    %18 = math.exp %17 : vector<16x16xf32>
    %cst_13 = arith.constant dense<0.000000e+00> : vector<16xf32>
    %19 = vector.multi_reduction <add>, %18, %cst_13 [1] : vector<16x16xf32> to vector<16xf32>
    %20 = vector.shape_cast %19 : vector<16xf32> to vector<16x1xf32>
    %21 = vector.broadcast %20 : vector<16x1xf32> to vector<16x16xf32>
    %22 = arith.divf %18, %21 : vector<16x16xf32>
    %c0_14 = arith.constant 0 : index
    %c0_15 = arith.constant 0 : index
    %c0_16 = arith.constant 0 : index
    %23 = vector.load %arg3[%c0_14, %c0_15, %c0_16] : memref<1x16x8xf32, #tpu.memory_space<vmem>>, vector<1x16x8xf32>
    %24 = vector.shape_cast %23 : vector<1x16x8xf32> to vector<16x8xf32>
    %cst_17 = arith.constant dense<0.000000e+00> : vector<16x8xf32>
    %25 = tpu.matmul %22, %24, %cst_17 {dimension_numbers = #tpu.dot_dimension_numbers<[1], [0], [0], [1], [0, 0, 1, 1], [], []>} : vector<16x16xf32>, vector<16x8xf32>, vector<16x8xf32> -> vector<16x8xf32>
    %c0_18 = arith.constant 0 : index
    %c0_19 = arith.constant 0 : index
    %c0_20 = arith.constant 0 : index
    %26 = vector.load %arg5[%c0_18, %c0_19, %c0_20] : memref<1x16x8xf32, #tpu.memory_space<vmem>>, vector<1x16x8xf32>
    %27 = vector.shape_cast %26 : vector<1x16x8xf32> to vector<16x8xf32>
    %28 = vector.shape_cast %25 : vector<16x8xf32> to vector<1x16x8xf32>
    tpu.vector_store %arg5[%c0_18, %c0_19, %c0_20], %28 {strides = array<i32>} : memref<1x16x8xf32, #tpu.memory_space<vmem>>, vector<1x16x8xf32>,
    return
  }
  func.func @transform_0(%arg0: i32) -> (i32, i32, i32) {
    %c0_i32 = arith.constant 0 : i32
    %c0_i32_0 = arith.constant 0 : i32
    %c0_i32_1 = arith.constant 0 : i32
    return %arg0, %c0_i32, %c0_i32_0 : i32, i32, i32
  }
  func.func @transform_1(%arg0: i32) -> (i32, i32, i32) {
    %c0_i32 = arith.constant 0 : i32
    %c0_i32_0 = arith.constant 0 : i32
    %c0_i32_1 = arith.constant 0 : i32
    return %arg0, %c0_i32, %c0_i32_0 : i32, i32, i32
  }
  func.func @transform_2(%arg0: i32) -> (i32, i32, i32) {
    %c0_i32 = arith.constant 0 : i32
    %c0_i32_0 = arith.constant 0 : i32
    %c0_i32_1 = arith.constant 0 : i32
    return %arg0, %c0_i32, %c0_i32_0 : i32, i32, i32
  }
  func.func @transform_3(%arg0: i32) -> (i32, i32, i32) {
    %c0_i32 = arith.constant 0 : i32
    %c0_i32_0 = arith.constant 0 : i32
    %c0_i32_1 = arith.constant 0 : i32
    return %arg0, %c0_i32, %c0_i32_0 : i32, i32, i32
  }
  func.func @transform_4(%arg0: i32) -> (i32, i32, i32) {
    %c0_i32 = arith.constant 0 : i32
    %c0_i32_0 = arith.constant 0 : i32
    %c0_i32_1 = arith.constant 0 : i32
    return %arg0, %c0_i32, %c0_i32_0 : i32, i32, i32
  }
  func.func @transform_5(%arg0: i32) -> (i32, i32, i32) {
    %c0_i32 = arith.constant 0 : i32
    %c0_i32_0 = arith.constant 0 : i32
    %c0_i32_1 = arith.constant 0 : i32
    return %arg0, %c0_i32, %c0_i32_0 : i32, i32, i32
  }
}

module attributes {stable_mosaic.version = 11 : i64} {
  func.func @_add_ln_kernel(%arg0: i32, %arg1: memref<32x32xf32, #tpu.memory_space<vmem>>, %arg2: memref<32x32xf32, #tpu.memory_space<vmem>>, %arg3: memref<1x32xf32, #tpu.memory_space<vmem>>, %arg4: memref<1x32xf32, #tpu.memory_space<vmem>>, %arg5: memref<32x32xf32, #tpu.memory_space<vmem>>) attributes {dimension_semantics = [#tpu.dimension_semantics<parallel>], iteration_bounds = array<i64: 1>, scalar_prefetch = 0 : i64, scratch_operands = 0 : i64, tpu.core_type = #tpu.core_type<tc>, window_params = [{transform_indices = @transform_0, window_bounds = array<i64: 32, 32>}, {transform_indices = @transform_1, window_bounds = array<i64: 32, 32>}, {pipeline_mode = #tpu.pipeline_mode<synchronous>, transform_indices = @transform_2, window_bounds = array<i64: 1, 32>}, {pipeline_mode = #tpu.pipeline_mode<synchronous>, transform_indices = @transform_3, window_bounds = array<i64: 1, 32>}, {transform_indices = @transform_4, window_bounds = array<i64: 32, 32>}]} {
    %c0 = arith.constant 0 : index
    %c0_0 = arith.constant 0 : index
    %0 = vector.load %arg1[%c0, %c0_0] : memref<32x32xf32, #tpu.memory_space<vmem>>, vector<32x32xf32>
    %c0_1 = arith.constant 0 : index
    %c0_2 = arith.constant 0 : index
    %1 = vector.load %arg2[%c0_1, %c0_2] : memref<32x32xf32, #tpu.memory_space<vmem>>, vector<32x32xf32>
    %2 = arith.addf %0, %1 : vector<32x32xf32>
    %cst = arith.constant dense<0.000000e+00> : vector<32xf32>
    %3 = vector.multi_reduction <add>, %2, %cst [1] : vector<32x32xf32> to vector<32xf32>
    %4 = vector.shape_cast %3 : vector<32xf32> to vector<32x1xf32>
    %cst_3 = arith.constant 3.200000e+01 : f32
    %5 = vector.broadcast %cst_3 : f32 to vector<32x1xf32>
    %6 = arith.divf %4, %5 : vector<32x1xf32>
    %7 = vector.broadcast %6 : vector<32x1xf32> to vector<32x32xf32>
    %8 = arith.subf %2, %7 : vector<32x32xf32>
    %9 = arith.mulf %8, %8 : vector<32x32xf32>
    %cst_4 = arith.constant dense<0.000000e+00> : vector<32xf32>
    %10 = vector.multi_reduction <add>, %9, %cst_4 [1] : vector<32x32xf32> to vector<32xf32>
    %11 = vector.shape_cast %10 : vector<32xf32> to vector<32x1xf32>
    %cst_5 = arith.constant 3.200000e+01 : f32
    %12 = vector.broadcast %cst_5 : f32 to vector<32x1xf32>
    %13 = arith.divf %11, %12 : vector<32x1xf32>
    %cst_6 = arith.constant 9.99999974E-6 : f32
    %14 = vector.broadcast %cst_6 : f32 to vector<32x1xf32>
    %15 = arith.addf %13, %14 : vector<32x1xf32>
    %16 = math.rsqrt %15 : vector<32x1xf32>
    %17 = vector.broadcast %16 : vector<32x1xf32> to vector<32x32xf32>
    %18 = arith.mulf %8, %17 : vector<32x32xf32>
    %c0_7 = arith.constant 0 : index
    %c0_8 = arith.constant 0 : index
    %19 = vector.load %arg3[%c0_7, %c0_8] : memref<1x32xf32, #tpu.memory_space<vmem>>, vector<1x32xf32>
    %20 = vector.broadcast %19 : vector<1x32xf32> to vector<32x32xf32>
    %21 = arith.mulf %18, %20 : vector<32x32xf32>
    %c0_9 = arith.constant 0 : index
    %c0_10 = arith.constant 0 : index
    %22 = vector.load %arg4[%c0_9, %c0_10] : memref<1x32xf32, #tpu.memory_space<vmem>>, vector<1x32xf32>
    %23 = vector.broadcast %22 : vector<1x32xf32> to vector<32x32xf32>
    %24 = arith.addf %21, %23 : vector<32x32xf32>
    %c0_11 = arith.constant 0 : index
    %c0_12 = arith.constant 0 : index
    %25 = vector.load %arg5[%c0_11, %c0_12] : memref<32x32xf32, #tpu.memory_space<vmem>>, vector<32x32xf32>
    tpu.vector_store %arg5[%c0_11, %c0_12], %24 {strides = array<i32>} : memref<32x32xf32, #tpu.memory_space<vmem>>, vector<32x32xf32>,
    return
  }
  func.func @transform_0(%arg0: i32) -> (i32, i32) {
    %c0_i32 = arith.constant 0 : i32
    %c0_i32_0 = arith.constant 0 : i32
    return %arg0, %c0_i32 : i32, i32
  }
  func.func @transform_1(%arg0: i32) -> (i32, i32) {
    %c0_i32 = arith.constant 0 : i32
    %c0_i32_0 = arith.constant 0 : i32
    return %arg0, %c0_i32 : i32, i32
  }
  func.func @transform_2(%arg0: i32) -> (i32, i32) {
    %c0_i32 = arith.constant 0 : i32
    %c0_i32_0 = arith.constant 0 : i32
    %c0_i32_1 = arith.constant 0 : i32
    return %c0_i32, %c0_i32_0 : i32, i32
  }
  func.func @transform_3(%arg0: i32) -> (i32, i32) {
    %c0_i32 = arith.constant 0 : i32
    %c0_i32_0 = arith.constant 0 : i32
    %c0_i32_1 = arith.constant 0 : i32
    return %c0_i32, %c0_i32_0 : i32, i32
  }
  func.func @transform_4(%arg0: i32) -> (i32, i32) {
    %c0_i32 = arith.constant 0 : i32
    %c0_i32_0 = arith.constant 0 : i32
    return %arg0, %c0_i32 : i32, i32
  }
}

module attributes {stable_mosaic.version = 11 : i64} {
  func.func @_ffn_kernel(%arg0: i32, %arg1: memref<32x32xf32, #tpu.memory_space<vmem>>, %arg2: memref<32x64xf32, #tpu.memory_space<vmem>>, %arg3: memref<1x64xf32, #tpu.memory_space<vmem>>, %arg4: memref<64x32xf32, #tpu.memory_space<vmem>>, %arg5: memref<1x32xf32, #tpu.memory_space<vmem>>, %arg6: memref<32x32xf32, #tpu.memory_space<vmem>>) attributes {dimension_semantics = [#tpu.dimension_semantics<parallel>], iteration_bounds = array<i64: 1>, scalar_prefetch = 0 : i64, scratch_operands = 0 : i64, tpu.core_type = #tpu.core_type<tc>, window_params = [{transform_indices = @transform_0, window_bounds = array<i64: 32, 32>}, {pipeline_mode = #tpu.pipeline_mode<synchronous>, transform_indices = @transform_1, window_bounds = array<i64: 32, 64>}, {pipeline_mode = #tpu.pipeline_mode<synchronous>, transform_indices = @transform_2, window_bounds = array<i64: 1, 64>}, {pipeline_mode = #tpu.pipeline_mode<synchronous>, transform_indices = @transform_3, window_bounds = array<i64: 64, 32>}, {pipeline_mode = #tpu.pipeline_mode<synchronous>, transform_indices = @transform_4, window_bounds = array<i64: 1, 32>}, {transform_indices = @transform_5, window_bounds = array<i64: 32, 32>}]} {
    %c0 = arith.constant 0 : index
    %c0_0 = arith.constant 0 : index
    %0 = vector.load %arg1[%c0, %c0_0] : memref<32x32xf32, #tpu.memory_space<vmem>>, vector<32x32xf32>
    %c0_1 = arith.constant 0 : index
    %c0_2 = arith.constant 0 : index
    %1 = vector.load %arg2[%c0_1, %c0_2] : memref<32x64xf32, #tpu.memory_space<vmem>>, vector<32x64xf32>
    %cst = arith.constant dense<0.000000e+00> : vector<32x64xf32>
    %2 = tpu.matmul %0, %1, %cst {dimension_numbers = #tpu.dot_dimension_numbers<[1], [0], [0], [1], [0, 0, 1, 1], [], []>} : vector<32x32xf32>, vector<32x64xf32>, vector<32x64xf32> -> vector<32x64xf32>
    %c0_3 = arith.constant 0 : index
    %c0_4 = arith.constant 0 : index
    %3 = vector.load %arg3[%c0_3, %c0_4] : memref<1x64xf32, #tpu.memory_space<vmem>>, vector<1x64xf32>
    %4 = vector.broadcast %3 : vector<1x64xf32> to vector<32x64xf32>
    %5 = arith.addf %2, %4 : vector<32x64xf32>
    %cst_5 = arith.constant 0.000000e+00 : f32
    %6 = vector.broadcast %cst_5 : f32 to vector<32x64xf32>
    %7 = arith.maximumf %5, %6 : vector<32x64xf32>
    %c0_6 = arith.constant 0 : index
    %c0_7 = arith.constant 0 : index
    %8 = vector.load %arg4[%c0_6, %c0_7] : memref<64x32xf32, #tpu.memory_space<vmem>>, vector<64x32xf32>
    %cst_8 = arith.constant dense<0.000000e+00> : vector<32x32xf32>
    %9 = tpu.matmul %7, %8, %cst_8 {dimension_numbers = #tpu.dot_dimension_numbers<[1], [0], [0], [1], [0, 0, 1, 1], [], []>} : vector<32x64xf32>, vector<64x32xf32>, vector<32x32xf32> -> vector<32x32xf32>
    %c0_9 = arith.constant 0 : index
    %c0_10 = arith.constant 0 : index
    %10 = vector.load %arg5[%c0_9, %c0_10] : memref<1x32xf32, #tpu.memory_space<vmem>>, vector<1x32xf32>
    %11 = vector.broadcast %10 : vector<1x32xf32> to vector<32x32xf32>
    %12 = arith.addf %9, %11 : vector<32x32xf32>
    %c0_11 = arith.constant 0 : index
    %c0_12 = arith.constant 0 : index
    %13 = vector.load %arg6[%c0_11, %c0_12] : memref<32x32xf32, #tpu.memory_space<vmem>>, vector<32x32xf32>
    tpu.vector_store %arg6[%c0_11, %c0_12], %12 {strides = array<i32>} : memref<32x32xf32, #tpu.memory_space<vmem>>, vector<32x32xf32>,
    return
  }
  func.func @transform_0(%arg0: i32) -> (i32, i32) {
    %c0_i32 = arith.constant 0 : i32
    %c0_i32_0 = arith.constant 0 : i32
    return %arg0, %c0_i32 : i32, i32
  }
  func.func @transform_1(%arg0: i32) -> (i32, i32) {
    %c0_i32 = arith.constant 0 : i32
    %c0_i32_0 = arith.constant 0 : i32
    %c0_i32_1 = arith.constant 0 : i32
    return %c0_i32, %c0_i32_0 : i32, i32
  }
  func.func @transform_2(%arg0: i32) -> (i32, i32) {
    %c0_i32 = arith.constant 0 : i32
    %c0_i32_0 = arith.constant 0 : i32
    %c0_i32_1 = arith.constant 0 : i32
    return %c0_i32, %c0_i32_0 : i32, i32
  }
  func.func @transform_3(%arg0: i32) -> (i32, i32) {
    %c0_i32 = arith.constant 0 : i32
    %c0_i32_0 = arith.constant 0 : i32
    %c0_i32_1 = arith.constant 0 : i32
    return %c0_i32, %c0_i32_0 : i32, i32
  }
  func.func @transform_4(%arg0: i32) -> (i32, i32) {
    %c0_i32 = arith.constant 0 : i32
    %c0_i32_0 = arith.constant 0 : i32
    %c0_i32_1 = arith.constant 0 : i32
    return %c0_i32, %c0_i32_0 : i32, i32
  }
  func.func @transform_5(%arg0: i32) -> (i32, i32) {
    %c0_i32 = arith.constant 0 : i32
    %c0_i32_0 = arith.constant 0 : i32
    return %arg0, %c0_i32 : i32, i32
  }
}

module attributes {stable_mosaic.version = 11 : i64} {
  func.func @_dense_kernel(%arg0: i32, %arg1: memref<16x16xf32, #tpu.memory_space<vmem>>, %arg2: memref<16x32xf32, #tpu.memory_space<vmem>>, %arg3: memref<1x32xf32, #tpu.memory_space<vmem>>, %arg4: memref<16x32xf32, #tpu.memory_space<vmem>>) attributes {dimension_semantics = [#tpu.dimension_semantics<parallel>], iteration_bounds = array<i64: 1>, scalar_prefetch = 0 : i64, scratch_operands = 0 : i64, tpu.core_type = #tpu.core_type<tc>, window_params = [{transform_indices = @transform_0, window_bounds = array<i64: 16, 16>}, {pipeline_mode = #tpu.pipeline_mode<synchronous>, transform_indices = @transform_1, window_bounds = array<i64: 16, 32>}, {pipeline_mode = #tpu.pipeline_mode<synchronous>, transform_indices = @transform_2, window_bounds = array<i64: 1, 32>}, {transform_indices = @transform_3, window_bounds = array<i64: 16, 32>}]} {
    %c0 = arith.constant 0 : index
    %c0_0 = arith.constant 0 : index
    %0 = vector.load %arg1[%c0, %c0_0] : memref<16x16xf32, #tpu.memory_space<vmem>>, vector<16x16xf32>
    %c0_1 = arith.constant 0 : index
    %c0_2 = arith.constant 0 : index
    %1 = vector.load %arg2[%c0_1, %c0_2] : memref<16x32xf32, #tpu.memory_space<vmem>>, vector<16x32xf32>
    %cst = arith.constant dense<0.000000e+00> : vector<16x32xf32>
    %2 = tpu.matmul %0, %1, %cst {dimension_numbers = #tpu.dot_dimension_numbers<[1], [0], [0], [1], [0, 0, 1, 1], [], []>} : vector<16x16xf32>, vector<16x32xf32>, vector<16x32xf32> -> vector<16x32xf32>
    %c0_3 = arith.constant 0 : index
    %c0_4 = arith.constant 0 : index
    %3 = vector.load %arg3[%c0_3, %c0_4] : memref<1x32xf32, #tpu.memory_space<vmem>>, vector<1x32xf32>
    %4 = vector.broadcast %3 : vector<1x32xf32> to vector<16x32xf32>
    %5 = arith.addf %2, %4 : vector<16x32xf32>
    %c0_5 = arith.constant 0 : index
    %c0_6 = arith.constant 0 : index
    %6 = vector.load %arg4[%c0_5, %c0_6] : memref<16x32xf32, #tpu.memory_space<vmem>>, vector<16x32xf32>
    tpu.vector_store %arg4[%c0_5, %c0_6], %5 {strides = array<i32>} : memref<16x32xf32, #tpu.memory_space<vmem>>, vector<16x32xf32>,
    return
  }
  func.func @transform_0(%arg0: i32) -> (i32, i32) {
    %c0_i32 = arith.constant 0 : i32
    %c0_i32_0 = arith.constant 0 : i32
    return %arg0, %c0_i32 : i32, i32
  }
  func.func @transform_1(%arg0: i32) -> (i32, i32) {
    %c0_i32 = arith.constant 0 : i32
    %c0_i32_0 = arith.constant 0 : i32
    %c0_i32_1 = arith.constant 0 : i32
    return %c0_i32, %c0_i32_0 : i32, i32
  }
  func.func @transform_2(%arg0: i32) -> (i32, i32) {
    %c0_i32 = arith.constant 0 : i32
    %c0_i32_0 = arith.constant 0 : i32
    %c0_i32_1 = arith.constant 0 : i32
    return %c0_i32, %c0_i32_0 : i32, i32
  }
  func.func @transform_3(%arg0: i32) -> (i32, i32) {
    %c0_i32 = arith.constant 0 : i32
    %c0_i32_0 = arith.constant 0 : i32
    return %arg0, %c0_i32 : i32, i32
  }
}

module attributes {stable_mosaic.version = 11 : i64} {
  func.func @_dense_kernel(%arg0: i32, %arg1: memref<16x32xf32, #tpu.memory_space<vmem>>, %arg2: memref<32x32xf32, #tpu.memory_space<vmem>>, %arg3: memref<1x32xf32, #tpu.memory_space<vmem>>, %arg4: memref<16x32xf32, #tpu.memory_space<vmem>>) attributes {dimension_semantics = [#tpu.dimension_semantics<parallel>], iteration_bounds = array<i64: 1>, scalar_prefetch = 0 : i64, scratch_operands = 0 : i64, tpu.core_type = #tpu.core_type<tc>, window_params = [{transform_indices = @transform_0, window_bounds = array<i64: 16, 32>}, {pipeline_mode = #tpu.pipeline_mode<synchronous>, transform_indices = @transform_1, window_bounds = array<i64: 32, 32>}, {pipeline_mode = #tpu.pipeline_mode<synchronous>, transform_indices = @transform_2, window_bounds = array<i64: 1, 32>}, {transform_indices = @transform_3, window_bounds = array<i64: 16, 32>}]} {
    %c0 = arith.constant 0 : index
    %c0_0 = arith.constant 0 : index
    %0 = vector.load %arg1[%c0, %c0_0] : memref<16x32xf32, #tpu.memory_space<vmem>>, vector<16x32xf32>
    %c0_1 = arith.constant 0 : index
    %c0_2 = arith.constant 0 : index
    %1 = vector.load %arg2[%c0_1, %c0_2] : memref<32x32xf32, #tpu.memory_space<vmem>>, vector<32x32xf32>
    %cst = arith.constant dense<0.000000e+00> : vector<16x32xf32>
    %2 = tpu.matmul %0, %1, %cst {dimension_numbers = #tpu.dot_dimension_numbers<[1], [0], [0], [1], [0, 0, 1, 1], [], []>} : vector<16x32xf32>, vector<32x32xf32>, vector<16x32xf32> -> vector<16x32xf32>
    %c0_3 = arith.constant 0 : index
    %c0_4 = arith.constant 0 : index
    %3 = vector.load %arg3[%c0_3, %c0_4] : memref<1x32xf32, #tpu.memory_space<vmem>>, vector<1x32xf32>
    %4 = vector.broadcast %3 : vector<1x32xf32> to vector<16x32xf32>
    %5 = arith.addf %2, %4 : vector<16x32xf32>
    %c0_5 = arith.constant 0 : index
    %c0_6 = arith.constant 0 : index
    %6 = vector.load %arg4[%c0_5, %c0_6] : memref<16x32xf32, #tpu.memory_space<vmem>>, vector<16x32xf32>
    tpu.vector_store %arg4[%c0_5, %c0_6], %5 {strides = array<i32>} : memref<16x32xf32, #tpu.memory_space<vmem>>, vector<16x32xf32>,
    return
  }
  func.func @transform_0(%arg0: i32) -> (i32, i32) {
    %c0_i32 = arith.constant 0 : i32
    %c0_i32_0 = arith.constant 0 : i32
    return %arg0, %c0_i32 : i32, i32
  }
  func.func @transform_1(%arg0: i32) -> (i32, i32) {
    %c0_i32 = arith.constant 0 : i32
    %c0_i32_0 = arith.constant 0 : i32
    %c0_i32_1 = arith.constant 0 : i32
    return %c0_i32, %c0_i32_0 : i32, i32
  }
  func.func @transform_2(%arg0: i32) -> (i32, i32) {
    %c0_i32 = arith.constant 0 : i32
    %c0_i32_0 = arith.constant 0 : i32
    %c0_i32_1 = arith.constant 0 : i32
    return %c0_i32, %c0_i32_0 : i32, i32
  }
  func.func @transform_3(%arg0: i32) -> (i32, i32) {
    %c0_i32 = arith.constant 0 : i32
    %c0_i32_0 = arith.constant 0 : i32
    return %arg0, %c0_i32 : i32, i32
  }
}

module attributes {stable_mosaic.version = 11 : i64} {
  func.func @_attn_kernel(%arg0: i32, %arg1: memref<1x8x8xf32, #tpu.memory_space<vmem>>, %arg2: memref<1x8x8xf32, #tpu.memory_space<vmem>>, %arg3: memref<1x8x8xf32, #tpu.memory_space<vmem>>, %arg4: memref<1x8x8xf32, #tpu.memory_space<vmem>>, %arg5: memref<1x8x8xf32, #tpu.memory_space<vmem>>, %arg6: memref<1x8x8xf32, #tpu.memory_space<vmem>>) attributes {dimension_semantics = [#tpu.dimension_semantics<parallel>], iteration_bounds = array<i64: 8>, scalar_prefetch = 0 : i64, scratch_operands = 0 : i64, tpu.core_type = #tpu.core_type<tc>, window_params = [{transform_indices = @transform_0, window_bounds = array<i64: 1, 8, 8>}, {transform_indices = @transform_1, window_bounds = array<i64: 1, 8, 8>}, {transform_indices = @transform_2, window_bounds = array<i64: 1, 8, 8>}, {transform_indices = @transform_3, window_bounds = array<i64: 1, 8, 8>}, {transform_indices = @transform_4, window_bounds = array<i64: 1, 8, 8>}, {transform_indices = @transform_5, window_bounds = array<i64: 1, 8, 8>}]} {
    %c0 = arith.constant 0 : index
    %c0_0 = arith.constant 0 : index
    %c0_1 = arith.constant 0 : index
    %0 = vector.load %arg1[%c0, %c0_0, %c0_1] : memref<1x8x8xf32, #tpu.memory_space<vmem>>, vector<1x8x8xf32>
    %1 = vector.shape_cast %0 : vector<1x8x8xf32> to vector<8x8xf32>
    %c0_2 = arith.constant 0 : index
    %c0_3 = arith.constant 0 : index
    %c0_4 = arith.constant 0 : index
    %2 = vector.load %arg2[%c0_2, %c0_3, %c0_4] : memref<1x8x8xf32, #tpu.memory_space<vmem>>, vector<1x8x8xf32>
    %3 = vector.shape_cast %2 : vector<1x8x8xf32> to vector<8x8xf32>
    %4 = tpu.transpose %3, [1, 0] : vector<8x8xf32> -> vector<8x8xf32>
    %cst = arith.constant dense<0.000000e+00> : vector<8x8xf32>
    %5 = tpu.matmul %1, %4, %cst {dimension_numbers = #tpu.dot_dimension_numbers<[1], [0], [0], [1], [0, 0, 1, 1], [], []>} : vector<8x8xf32>, vector<8x8xf32>, vector<8x8xf32> -> vector<8x8xf32>
    %cst_5 = arith.constant 0.353553385 : f32
    %6 = vector.broadcast %cst_5 : f32 to vector<8x8xf32>
    %7 = arith.mulf %5, %6 : vector<8x8xf32>
    %c0_6 = arith.constant 0 : index
    %c0_7 = arith.constant 0 : index
    %c0_8 = arith.constant 0 : index
    %8 = vector.load %arg6[%c0_6, %c0_7, %c0_8] : memref<1x8x8xf32, #tpu.memory_space<vmem>>, vector<1x8x8xf32>
    %9 = vector.shape_cast %8 : vector<1x8x8xf32> to vector<8x8xf32>
    %10 = vector.shape_cast %7 : vector<8x8xf32> to vector<1x8x8xf32>
    tpu.vector_store %arg6[%c0_6, %c0_7, %c0_8], %10 {strides = array<i32>} : memref<1x8x8xf32, #tpu.memory_space<vmem>>, vector<1x8x8xf32>,
    %c0_9 = arith.constant 0 : index
    %c0_10 = arith.constant 0 : index
    %c0_11 = arith.constant 0 : index
    %11 = vector.load %arg4[%c0_9, %c0_10, %c0_11] : memref<1x8x8xf32, #tpu.memory_space<vmem>>, vector<1x8x8xf32>
    %12 = vector.shape_cast %11 : vector<1x8x8xf32> to vector<8x8xf32>
    %13 = arith.addf %7, %12 : vector<8x8xf32>
    %cst_12 = arith.constant dense<0xFF800000> : vector<8xf32>
    %14 = vector.multi_reduction <maximumf>, %13, %cst_12 [1] : vector<8x8xf32> to vector<8xf32>
    %15 = vector.shape_cast %14 : vector<8xf32> to vector<8x1xf32>
    %16 = vector.broadcast %15 : vector<8x1xf32> to vector<8x8xf32>
    %17 = arith.subf %13, %16 : vector<8x8xf32>
    %18 = math.exp %17 : vector<8x8xf32>
    %cst_13 = arith.constant dense<0.000000e+00> : vector<8xf32>
    %19 = vector.multi_reduction <add>, %18, %cst_13 [1] : vector<8x8xf32> to vector<8xf32>
    %20 = vector.shape_cast %19 : vector<8xf32> to vector<8x1xf32>
    %21 = vector.broadcast %20 : vector<8x1xf32> to vector<8x8xf32>
    %22 = arith.divf %18, %21 : vector<8x8xf32>
    %c0_14 = arith.constant 0 : index
    %c0_15 = arith.constant 0 : index
    %c0_16 = arith.constant 0 : index
    %23 = vector.load %arg3[%c0_14, %c0_15, %c0_16] : memref<1x8x8xf32, #tpu.memory_space<vmem>>, vector<1x8x8xf32>
    %24 = vector.shape_cast %23 : vector<1x8x8xf32> to vector<8x8xf32>
    %cst_17 = arith.constant dense<0.000000e+00> : vector<8x8xf32>
    %25 = tpu.matmul %22, %24, %cst_17 {dimension_numbers = #tpu.dot_dimension_numbers<[1], [0], [0], [1], [0, 0, 1, 1], [], []>} : vector<8x8xf32>, vector<8x8xf32>, vector<8x8xf32> -> vector<8x8xf32>
    %c0_18 = arith.constant 0 : index
    %c0_19 = arith.constant 0 : index
    %c0_20 = arith.constant 0 : index
    %26 = vector.load %arg5[%c0_18, %c0_19, %c0_20] : memref<1x8x8xf32, #tpu.memory_space<vmem>>, vector<1x8x8xf32>
    %27 = vector.shape_cast %26 : vector<1x8x8xf32> to vector<8x8xf32>
    %28 = vector.shape_cast %25 : vector<8x8xf32> to vector<1x8x8xf32>
    tpu.vector_store %arg5[%c0_18, %c0_19, %c0_20], %28 {strides = array<i32>} : memref<1x8x8xf32, #tpu.memory_space<vmem>>, vector<1x8x8xf32>,
    return
  }
  func.func @transform_0(%arg0: i32) -> (i32, i32, i32) {
    %c0_i32 = arith.constant 0 : i32
    %c0_i32_0 = arith.constant 0 : i32
    %c0_i32_1 = arith.constant 0 : i32
    return %arg0, %c0_i32, %c0_i32_0 : i32, i32, i32
  }
  func.func @transform_1(%arg0: i32) -> (i32, i32, i32) {
    %c0_i32 = arith.constant 0 : i32
    %c0_i32_0 = arith.constant 0 : i32
    %c0_i32_1 = arith.constant 0 : i32
    return %arg0, %c0_i32, %c0_i32_0 : i32, i32, i32
  }
  func.func @transform_2(%arg0: i32) -> (i32, i32, i32) {
    %c0_i32 = arith.constant 0 : i32
    %c0_i32_0 = arith.constant 0 : i32
    %c0_i32_1 = arith.constant 0 : i32
    return %arg0, %c0_i32, %c0_i32_0 : i32, i32, i32
  }
  func.func @transform_3(%arg0: i32) -> (i32, i32, i32) {
    %c0_i32 = arith.constant 0 : i32
    %c0_i32_0 = arith.constant 0 : i32
    %c0_i32_1 = arith.constant 0 : i32
    return %arg0, %c0_i32, %c0_i32_0 : i32, i32, i32
  }
  func.func @transform_4(%arg0: i32) -> (i32, i32, i32) {
    %c0_i32 = arith.constant 0 : i32
    %c0_i32_0 = arith.constant 0 : i32
    %c0_i32_1 = arith.constant 0 : i32
    return %arg0, %c0_i32, %c0_i32_0 : i32, i32, i32
  }
  func.func @transform_5(%arg0: i32) -> (i32, i32, i32) {
    %c0_i32 = arith.constant 0 : i32
    %c0_i32_0 = arith.constant 0 : i32
    %c0_i32_1 = arith.constant 0 : i32
    return %arg0, %c0_i32, %c0_i32_0 : i32, i32, i32
  }
}

module attributes {stable_mosaic.version = 11 : i64} {
  func.func @_ffn_kernel(%arg0: i32, %arg1: memref<16x32xf32, #tpu.memory_space<vmem>>, %arg2: memref<32x64xf32, #tpu.memory_space<vmem>>, %arg3: memref<1x64xf32, #tpu.memory_space<vmem>>, %arg4: memref<64x32xf32, #tpu.memory_space<vmem>>, %arg5: memref<1x32xf32, #tpu.memory_space<vmem>>, %arg6: memref<16x32xf32, #tpu.memory_space<vmem>>) attributes {dimension_semantics = [#tpu.dimension_semantics<parallel>], iteration_bounds = array<i64: 1>, scalar_prefetch = 0 : i64, scratch_operands = 0 : i64, tpu.core_type = #tpu.core_type<tc>, window_params = [{transform_indices = @transform_0, window_bounds = array<i64: 16, 32>}, {pipeline_mode = #tpu.pipeline_mode<synchronous>, transform_indices = @transform_1, window_bounds = array<i64: 32, 64>}, {pipeline_mode = #tpu.pipeline_mode<synchronous>, transform_indices = @transform_2, window_bounds = array<i64: 1, 64>}, {pipeline_mode = #tpu.pipeline_mode<synchronous>, transform_indices = @transform_3, window_bounds = array<i64: 64, 32>}, {pipeline_mode = #tpu.pipeline_mode<synchronous>, transform_indices = @transform_4, window_bounds = array<i64: 1, 32>}, {transform_indices = @transform_5, window_bounds = array<i64: 16, 32>}]} {
    %c0 = arith.constant 0 : index
    %c0_0 = arith.constant 0 : index
    %0 = vector.load %arg1[%c0, %c0_0] : memref<16x32xf32, #tpu.memory_space<vmem>>, vector<16x32xf32>
    %c0_1 = arith.constant 0 : index
    %c0_2 = arith.constant 0 : index
    %1 = vector.load %arg2[%c0_1, %c0_2] : memref<32x64xf32, #tpu.memory_space<vmem>>, vector<32x64xf32>
    %cst = arith.constant dense<0.000000e+00> : vector<16x64xf32>
    %2 = tpu.matmul %0, %1, %cst {dimension_numbers = #tpu.dot_dimension_numbers<[1], [0], [0], [1], [0, 0, 1, 1], [], []>} : vector<16x32xf32>, vector<32x64xf32>, vector<16x64xf32> -> vector<16x64xf32>
    %c0_3 = arith.constant 0 : index
    %c0_4 = arith.constant 0 : index
    %3 = vector.load %arg3[%c0_3, %c0_4] : memref<1x64xf32, #tpu.memory_space<vmem>>, vector<1x64xf32>
    %4 = vector.broadcast %3 : vector<1x64xf32> to vector<16x64xf32>
    %5 = arith.addf %2, %4 : vector<16x64xf32>
    %cst_5 = arith.constant 0.000000e+00 : f32
    %6 = vector.broadcast %cst_5 : f32 to vector<16x64xf32>
    %7 = arith.maximumf %5, %6 : vector<16x64xf32>
    %c0_6 = arith.constant 0 : index
    %c0_7 = arith.constant 0 : index
    %8 = vector.load %arg4[%c0_6, %c0_7] : memref<64x32xf32, #tpu.memory_space<vmem>>, vector<64x32xf32>
    %cst_8 = arith.constant dense<0.000000e+00> : vector<16x32xf32>
    %9 = tpu.matmul %7, %8, %cst_8 {dimension_numbers = #tpu.dot_dimension_numbers<[1], [0], [0], [1], [0, 0, 1, 1], [], []>} : vector<16x64xf32>, vector<64x32xf32>, vector<16x32xf32> -> vector<16x32xf32>
    %c0_9 = arith.constant 0 : index
    %c0_10 = arith.constant 0 : index
    %10 = vector.load %arg5[%c0_9, %c0_10] : memref<1x32xf32, #tpu.memory_space<vmem>>, vector<1x32xf32>
    %11 = vector.broadcast %10 : vector<1x32xf32> to vector<16x32xf32>
    %12 = arith.addf %9, %11 : vector<16x32xf32>
    %c0_11 = arith.constant 0 : index
    %c0_12 = arith.constant 0 : index
    %13 = vector.load %arg6[%c0_11, %c0_12] : memref<16x32xf32, #tpu.memory_space<vmem>>, vector<16x32xf32>
    tpu.vector_store %arg6[%c0_11, %c0_12], %12 {strides = array<i32>} : memref<16x32xf32, #tpu.memory_space<vmem>>, vector<16x32xf32>,
    return
  }
  func.func @transform_0(%arg0: i32) -> (i32, i32) {
    %c0_i32 = arith.constant 0 : i32
    %c0_i32_0 = arith.constant 0 : i32
    return %arg0, %c0_i32 : i32, i32
  }
  func.func @transform_1(%arg0: i32) -> (i32, i32) {
    %c0_i32 = arith.constant 0 : i32
    %c0_i32_0 = arith.constant 0 : i32
    %c0_i32_1 = arith.constant 0 : i32
    return %c0_i32, %c0_i32_0 : i32, i32
  }
  func.func @transform_2(%arg0: i32) -> (i32, i32) {
    %c0_i32 = arith.constant 0 : i32
    %c0_i32_0 = arith.constant 0 : i32
    %c0_i32_1 = arith.constant 0 : i32
    return %c0_i32, %c0_i32_0 : i32, i32
  }
  func.func @transform_3(%arg0: i32) -> (i32, i32) {
    %c0_i32 = arith.constant 0 : i32
    %c0_i32_0 = arith.constant 0 : i32
    %c0_i32_1 = arith.constant 0 : i32
    return %c0_i32, %c0_i32_0 : i32, i32
  }
  func.func @transform_4(%arg0: i32) -> (i32, i32) {
    %c0_i32 = arith.constant 0 : i32
    %c0_i32_0 = arith.constant 0 : i32
    %c0_i32_1 = arith.constant 0 : i32
    return %c0_i32, %c0_i32_0 : i32, i32
  }
  func.func @transform_5(%arg0: i32) -> (i32, i32) {
    %c0_i32 = arith.constant 0 : i32
    %c0_i32_0 = arith.constant 0 : i32
    return %arg0, %c0_i32 : i32, i32
  }
}

module attributes {stable_mosaic.version = 11 : i64} {
  func.func @_dense_kernel(%arg0: i32, %arg1: memref<2x768xf32, #tpu.memory_space<vmem>>, %arg2: memref<768x2xf32, #tpu.memory_space<vmem>>, %arg3: memref<1x2xf32, #tpu.memory_space<vmem>>, %arg4: memref<2x2xf32, #tpu.memory_space<vmem>>) attributes {dimension_semantics = [#tpu.dimension_semantics<parallel>], iteration_bounds = array<i64: 1>, scalar_prefetch = 0 : i64, scratch_operands = 0 : i64, tpu.core_type = #tpu.core_type<tc>, window_params = [{transform_indices = @transform_0, window_bounds = array<i64: 2, 768>}, {pipeline_mode = #tpu.pipeline_mode<synchronous>, transform_indices = @transform_1, window_bounds = array<i64: 768, 2>}, {pipeline_mode = #tpu.pipeline_mode<synchronous>, transform_indices = @transform_2, window_bounds = array<i64: 1, 2>}, {transform_indices = @transform_3, window_bounds = array<i64: 2, 2>}]} {
    %c0 = arith.constant 0 : index
    %c0_0 = arith.constant 0 : index
    %0 = vector.load %arg1[%c0, %c0_0] : memref<2x768xf32, #tpu.memory_space<vmem>>, vector<2x768xf32>
    %c0_1 = arith.constant 0 : index
    %c0_2 = arith.constant 0 : index
    %1 = vector.load %arg2[%c0_1, %c0_2] : memref<768x2xf32, #tpu.memory_space<vmem>>, vector<768x2xf32>
    %cst = arith.constant dense<0.000000e+00> : vector<2x2xf32>
    %2 = tpu.matmul %0, %1, %cst {dimension_numbers = #tpu.dot_dimension_numbers<[1], [0], [0], [1], [0, 0, 1, 1], [], []>} : vector<2x768xf32>, vector<768x2xf32>, vector<2x2xf32> -> vector<2x2xf32>
    %c0_3 = arith.constant 0 : index
    %c0_4 = arith.constant 0 : index
    %3 = vector.load %arg3[%c0_3, %c0_4] : memref<1x2xf32, #tpu.memory_space<vmem>>, vector<1x2xf32>
    %4 = vector.broadcast %3 : vector<1x2xf32> to vector<2x2xf32>
    %5 = arith.addf %2, %4 : vector<2x2xf32>
    %c0_5 = arith.constant 0 : index
    %c0_6 = arith.constant 0 : index
    %6 = vector.load %arg4[%c0_5, %c0_6] : memref<2x2xf32, #tpu.memory_space<vmem>>, vector<2x2xf32>
    tpu.vector_store %arg4[%c0_5, %c0_6], %5 {strides = array<i32>} : memref<2x2xf32, #tpu.memory_space<vmem>>, vector<2x2xf32>,
    return
  }
  func.func @transform_0(%arg0: i32) -> (i32, i32) {
    %c0_i32 = arith.constant 0 : i32
    %c0_i32_0 = arith.constant 0 : i32
    return %arg0, %c0_i32 : i32, i32
  }
  func.func @transform_1(%arg0: i32) -> (i32, i32) {
    %c0_i32 = arith.constant 0 : i32
    %c0_i32_0 = arith.constant 0 : i32
    %c0_i32_1 = arith.constant 0 : i32
    return %c0_i32, %c0_i32_0 : i32, i32
  }
  func.func @transform_2(%arg0: i32) -> (i32, i32) {
    %c0_i32 = arith.constant 0 : i32
    %c0_i32_0 = arith.constant 0 : i32
    %c0_i32_1 = arith.constant 0 : i32
    return %c0_i32, %c0_i32_0 : i32, i32
  }
  func.func @transform_3(%arg0: i32) -> (i32, i32) {
    %c0_i32 = arith.constant 0 : i32
    %c0_i32_0 = arith.constant 0 : i32
    return %arg0, %c0_i32 : i32, i32
  }
}

module attributes {stable_mosaic.version = 11 : i64} {
  func.func @_add_ln_kernel(%arg0: i32, %arg1: memref<16x32xf32, #tpu.memory_space<vmem>>, %arg2: memref<16x32xf32, #tpu.memory_space<vmem>>, %arg3: memref<1x32xf32, #tpu.memory_space<vmem>>, %arg4: memref<1x32xf32, #tpu.memory_space<vmem>>, %arg5: memref<16x32xf32, #tpu.memory_space<vmem>>) attributes {dimension_semantics = [#tpu.dimension_semantics<parallel>], iteration_bounds = array<i64: 1>, scalar_prefetch = 0 : i64, scratch_operands = 0 : i64, tpu.core_type = #tpu.core_type<tc>, window_params = [{transform_indices = @transform_0, window_bounds = array<i64: 16, 32>}, {transform_indices = @transform_1, window_bounds = array<i64: 16, 32>}, {pipeline_mode = #tpu.pipeline_mode<synchronous>, transform_indices = @transform_2, window_bounds = array<i64: 1, 32>}, {pipeline_mode = #tpu.pipeline_mode<synchronous>, transform_indices = @transform_3, window_bounds = array<i64: 1, 32>}, {transform_indices = @transform_4, window_bounds = array<i64: 16, 32>}]} {
    %c0 = arith.constant 0 : index
    %c0_0 = arith.constant 0 : index
    %0 = vector.load %arg1[%c0, %c0_0] : memref<16x32xf32, #tpu.memory_space<vmem>>, vector<16x32xf32>
    %c0_1 = arith.constant 0 : index
    %c0_2 = arith.constant 0 : index
    %1 = vector.load %arg2[%c0_1, %c0_2] : memref<16x32xf32, #tpu.memory_space<vmem>>, vector<16x32xf32>
    %2 = arith.addf %0, %1 : vector<16x32xf32>
    %cst = arith.constant dense<0.000000e+00> : vector<16xf32>
    %3 = vector.multi_reduction <add>, %2, %cst [1] : vector<16x32xf32> to vector<16xf32>
    %4 = vector.shape_cast %3 : vector<16xf32> to vector<16x1xf32>
    %cst_3 = arith.constant 3.200000e+01 : f32
    %5 = vector.broadcast %cst_3 : f32 to vector<16x1xf32>
    %6 = arith.divf %4, %5 : vector<16x1xf32>
    %7 = vector.broadcast %6 : vector<16x1xf32> to vector<16x32xf32>
    %8 = arith.subf %2, %7 : vector<16x32xf32>
    %9 = arith.mulf %8, %8 : vector<16x32xf32>
    %cst_4 = arith.constant dense<0.000000e+00> : vector<16xf32>
    %10 = vector.multi_reduction <add>, %9, %cst_4 [1] : vector<16x32xf32> to vector<16xf32>
    %11 = vector.shape_cast %10 : vector<16xf32> to vector<16x1xf32>
    %cst_5 = arith.constant 3.200000e+01 : f32
    %12 = vector.broadcast %cst_5 : f32 to vector<16x1xf32>
    %13 = arith.divf %11, %12 : vector<16x1xf32>
    %cst_6 = arith.constant 9.99999974E-6 : f32
    %14 = vector.broadcast %cst_6 : f32 to vector<16x1xf32>
    %15 = arith.addf %13, %14 : vector<16x1xf32>
    %16 = math.rsqrt %15 : vector<16x1xf32>
    %17 = vector.broadcast %16 : vector<16x1xf32> to vector<16x32xf32>
    %18 = arith.mulf %8, %17 : vector<16x32xf32>
    %c0_7 = arith.constant 0 : index
    %c0_8 = arith.constant 0 : index
    %19 = vector.load %arg3[%c0_7, %c0_8] : memref<1x32xf32, #tpu.memory_space<vmem>>, vector<1x32xf32>
    %20 = vector.broadcast %19 : vector<1x32xf32> to vector<16x32xf32>
    %21 = arith.mulf %18, %20 : vector<16x32xf32>
    %c0_9 = arith.constant 0 : index
    %c0_10 = arith.constant 0 : index
    %22 = vector.load %arg4[%c0_9, %c0_10] : memref<1x32xf32, #tpu.memory_space<vmem>>, vector<1x32xf32>
    %23 = vector.broadcast %22 : vector<1x32xf32> to vector<16x32xf32>
    %24 = arith.addf %21, %23 : vector<16x32xf32>
    %c0_11 = arith.constant 0 : index
    %c0_12 = arith.constant 0 : index
    %25 = vector.load %arg5[%c0_11, %c0_12] : memref<16x32xf32, #tpu.memory_space<vmem>>, vector<16x32xf32>
    tpu.vector_store %arg5[%c0_11, %c0_12], %24 {strides = array<i32>} : memref<16x32xf32, #tpu.memory_space<vmem>>, vector<16x32xf32>,
    return
  }
  func.func @transform_0(%arg0: i32) -> (i32, i32) {
    %c0_i32 = arith.constant 0 : i32
    %c0_i32_0 = arith.constant 0 : i32
    return %arg0, %c0_i32 : i32, i32
  }
  func.func @transform_1(%arg0: i32) -> (i32, i32) {
    %c0_i32 = arith.constant 0 : i32
    %c0_i32_0 = arith.constant 0 : i32
    return %arg0, %c0_i32 : i32, i32
  }
  func.func @transform_2(%arg0: i32) -> (i32, i32) {
    %c0_i32 = arith.constant 0 : i32
    %c0_i32_0 = arith.constant 0 : i32
    %c0_i32_1 = arith.constant 0 : i32
    return %c0_i32, %c0_i32_0 : i32, i32
  }
  func.func @transform_3(%arg0: i32) -> (i32, i32) {
    %c0_i32 = arith.constant 0 : i32
    %c0_i32_0 = arith.constant 0 : i32
    %c0_i32_1 = arith.constant 0 : i32
    return %c0_i32, %c0_i32_0 : i32, i32
  }
  func.func @transform_4(%arg0: i32) -> (i32, i32) {
    %c0_i32 = arith.constant 0 : i32
    %c0_i32_0 = arith.constant 0 : i32
    return %arg0, %c0_i32 : i32, i32
  }
}

module attributes {stable_mosaic.version = 11 : i64} {
  func.func @_dense_kernel(%arg0: i32, %arg1: memref<2x768xf32, #tpu.memory_space<vmem>>, %arg2: memref<768x4xf32, #tpu.memory_space<vmem>>, %arg3: memref<1x4xf32, #tpu.memory_space<vmem>>, %arg4: memref<2x4xf32, #tpu.memory_space<vmem>>) attributes {dimension_semantics = [#tpu.dimension_semantics<parallel>], iteration_bounds = array<i64: 1>, scalar_prefetch = 0 : i64, scratch_operands = 0 : i64, tpu.core_type = #tpu.core_type<tc>, window_params = [{transform_indices = @transform_0, window_bounds = array<i64: 2, 768>}, {pipeline_mode = #tpu.pipeline_mode<synchronous>, transform_indices = @transform_1, window_bounds = array<i64: 768, 4>}, {pipeline_mode = #tpu.pipeline_mode<synchronous>, transform_indices = @transform_2, window_bounds = array<i64: 1, 4>}, {transform_indices = @transform_3, window_bounds = array<i64: 2, 4>}]} {
    %c0 = arith.constant 0 : index
    %c0_0 = arith.constant 0 : index
    %0 = vector.load %arg1[%c0, %c0_0] : memref<2x768xf32, #tpu.memory_space<vmem>>, vector<2x768xf32>
    %c0_1 = arith.constant 0 : index
    %c0_2 = arith.constant 0 : index
    %1 = vector.load %arg2[%c0_1, %c0_2] : memref<768x4xf32, #tpu.memory_space<vmem>>, vector<768x4xf32>
    %cst = arith.constant dense<0.000000e+00> : vector<2x4xf32>
    %2 = tpu.matmul %0, %1, %cst {dimension_numbers = #tpu.dot_dimension_numbers<[1], [0], [0], [1], [0, 0, 1, 1], [], []>} : vector<2x768xf32>, vector<768x4xf32>, vector<2x4xf32> -> vector<2x4xf32>
    %c0_3 = arith.constant 0 : index
    %c0_4 = arith.constant 0 : index
    %3 = vector.load %arg3[%c0_3, %c0_4] : memref<1x4xf32, #tpu.memory_space<vmem>>, vector<1x4xf32>
    %4 = vector.broadcast %3 : vector<1x4xf32> to vector<2x4xf32>
    %5 = arith.addf %2, %4 : vector<2x4xf32>
    %c0_5 = arith.constant 0 : index
    %c0_6 = arith.constant 0 : index
    %6 = vector.load %arg4[%c0_5, %c0_6] : memref<2x4xf32, #tpu.memory_space<vmem>>, vector<2x4xf32>
    tpu.vector_store %arg4[%c0_5, %c0_6], %5 {strides = array<i32>} : memref<2x4xf32, #tpu.memory_space<vmem>>, vector<2x4xf32>,
    return
  }
  func.func @transform_0(%arg0: i32) -> (i32, i32) {
    %c0_i32 = arith.constant 0 : i32
    %c0_i32_0 = arith.constant 0 : i32
    return %arg0, %c0_i32 : i32, i32
  }
  func.func @transform_1(%arg0: i32) -> (i32, i32) {
    %c0_i32 = arith.constant 0 : i32
    %c0_i32_0 = arith.constant 0 : i32
    %c0_i32_1 = arith.constant 0 : i32
    return %c0_i32, %c0_i32_0 : i32, i32
  }
  func.func @transform_2(%arg0: i32) -> (i32, i32) {
    %c0_i32 = arith.constant 0 : i32
    %c0_i32_0 = arith.constant 0 : i32
    %c0_i32_1 = arith.constant 0 : i32
    return %c0_i32, %c0_i32_0 : i32, i32
  }
  func.func @transform_3(%arg0: i32) -> (i32, i32) {
    %c0_i32 = arith.constant 0 : i32
    %c0_i32_0 = arith.constant 0 : i32
    return %arg0, %c0_i32 : i32, i32
  }
}

</mosaic_0001>

<bundles_post_ra>
// kernel: mgtn_forward.38
= control target key start
LH: loop header
LB: loop body
LE: loop exit
PB: predicated region body
PF: predicated region fallthrough
CT: control target
= control target key end

     0   :  { %vm29_vm0 = vcmask 261120   ;;  %s237_s1 = inlined_call_operand.vmem [shape: f32[32,32], index: 1, kind: input, shape index: {}]   ;;  %s238_s0 = inlined_call_operand.vmem [shape: f32[32,32], index: 0, kind: input, shape index: {}]   ;;  %s239_s2 = inlined_call_operand.vmem [shape: f32[1,32], index: 2, kind: input, shape index: {}]   ;;  %s240_s3 = inlined_call_operand.vmem [shape: f32[32,32], index: 3, kind: output, shape index: {}]  }
   0x1   :  { %v21_v0 = vld [vmem:[%s237_s1 + $0x18] sm:$0xff]  ;;  %v20_v1 = vld [vmem:[%s237_s1 + $0x10] sm:$0xff]  ;;  %v19_v2 = vld [vmem:[%s237_s1 + $0x8] sm:$0xff] }
   0x2   :  { %148 = vmatprep.subr.mxu0 %v21_v0  ;;  %162 = vmatprep.subr.mxu1 %v21_v0  ;;  %v18_v3 = vld [vmem:[%s237_s1] sm:$0xff]  ;;  %v16_v5 = vld [vmem:[%s238_s0 + $0x10] sm:$0xff]  ;;  %v15_v6 = vld [vmem:[%s238_s0 + $0x8] sm:$0xff] }
   0x3   :  { %149 = vmatpush3.msra.mxu0 %v21_v0  ;;  %166 = vmatpush3.msra.mxu1 %v21_v0  ;;  %v14_v4 = vld [vmem:[%s238_s0] sm:$0xff]  ;;  %v17_v7 = vld [vmem:[%s238_s0 + $0x18] sm:$0xff] }
   0x4   :  { %150 = vmatprep.subr.mxu0 %v20_v1  ;;  %163 = vmatprep.subr.mxu1 %v20_v1  ;;  %v135_v8 = vld [vmem:[%s239_s2] ss:$0 sm:$0xff] }
   0x5   :  { %151 = vmatpush3.msra.mxu0 %v20_v1  ;;  %167 = vmatpush3.msra.mxu1 %v20_v1 }
   0x6   :  { %152 = vmatprep.subr.mxu0 %v19_v2  ;;  %164 = vmatprep.subr.mxu1 %v19_v2 }
   0x7   :  { %153 = vmatpush3.msra.mxu0 %v19_v2  ;;  %168 = vmatpush3.msra.mxu1 %v19_v2 }
   0x8   :  { %154 = vmatprep.subr.mxu0 %v18_v3  ;;  %165 = vmatprep.subr.mxu1 %v18_v3 }
   0x9   :  { %155 = vmatpush3.msra.mxu0 %v18_v3  ;;  %169 = vmatpush3.msra.mxu1 %v18_v3 }
   0xa   :  { %156 = vmatprep.mubr.msk.f32.mxu0 %vm29_vm0, %v14_v4  ;;  %159 = vmatprep.mubr.msk.f32.mxu1 %vm29_vm0, %v16_v5 }
   0xb   :  { %157 = vmatmul.mubr.msk.f32.vlgmr.msra.gmra.mxu0 %vm29_vm0, %v15_v6  ;;  %160 = vmatmul.mubr.msk.f32.vlgmr.msra.gmra.mxu1 %vm29_vm0, %v17_v7 }
  0xcb   :  { %v158_v9 = vpop.f32.mrf.mxu0  ;;  %v161_v10 = vpop.f32.mrf.mxu1 }
  0xcc   :  { %v114_v11 = vadd.f32 %v158_v9, %v135_v8  ;;  %v124_v12 = vadd.f32 %v161_v10, %v135_v8 }
  0xcd   :  { %v108_v13 = vpop.f32.mrf.mxu0  ;;  %v118_v14 = vpop.f32.mrf.mxu1 }
  0xce   :  { %128 = vst.msk [vmem:[%s240_s3 + $0x8] sm:$0xff] %vm29_vm0, %v114_v11  ;;  %130 = vst.msk [vmem:[%s240_s3 + $0x18] sm:$0xff] %vm29_vm0, %v124_v12  ;;  %v109_v15 = vadd.f32 %v135_v8, %v108_v13  ;;  %v119_v16 = vadd.f32 %v135_v8, %v118_v14 }
  0xd0   :  { %127 = vst.msk [vmem:[%s240_s3] sm:$0xff] %vm29_vm0, %v109_v15  ;;  %129 = vst.msk [vmem:[%s240_s3 + $0x10] sm:$0xff] %vm29_vm0, %v119_v16 }

// kernel: mgtn_forward.36
= control target key start
LH: loop header
LB: loop body
LE: loop exit
PB: predicated region body
PF: predicated region fallthrough
CT: control target
= control target key end

     0   :  { %vm26_vm0 = vcmask 64512   ;;  %vm124_vm1 = vcmask 261120   ;;  %s203_s1 = inlined_call_operand.vmem [shape: f32[8,32], index: 1, kind: input, shape index: {}]   ;;  %s204_s0 = inlined_call_operand.vmem [shape: f32[32,8], index: 0, kind: input, shape index: {}]   ;;  %s205_s2 = inlined_call_operand.vmem [shape: f32[1,32], index: 2, kind: input, shape index: {}]   ;;  %s206_s3 = inlined_call_operand.vmem [shape: f32[32,32], index: 3, kind: output, shape index: {}]  }
   0x1   :  { %v18_v0 = vld [vmem:[%s203_s1] sm:$0xff]  ;;  %v16_v2 = vld [vmem:[%s204_s0 + $0x10] sm:$0xff]  ;;  %v15_v3 = vld [vmem:[%s204_s0 + $0x8] sm:$0xff] }
   0x2   :  { %v14_v1 = vld [vmem:[%s204_s0] sm:$0xff]  ;;  %143 = vmatprep.subr.mxu0 %v18_v0  ;;  %151 = vmatprep.subr.mxu1 %v18_v0  ;;  %v17_v4 = vld [vmem:[%s204_s0 + $0x18] sm:$0xff] }
   0x3   :  { %144 = vmatpush3.msra.mxu0 %v18_v0  ;;  %152 = vmatpush3.msra.mxu1 %v18_v0  ;;  %v133_v5 = vld [vmem:[%s205_s2] ss:$0 sm:$0xff] }
   0x4   :  { %145 = vmatprep.mubr.msk.f32.mxu0 %vm26_vm0, %v14_v1  ;;  %148 = vmatprep.mubr.msk.f32.mxu1 %vm26_vm0, %v16_v2 }
   0x5   :  { %146 = vmatmul.mubr.msk.f32.vlgmr.msra.gmra.mxu0 %vm26_vm0, %v15_v3  ;;  %149 = vmatmul.mubr.msk.f32.vlgmr.msra.gmra.mxu1 %vm26_vm0, %v17_v4 }
  0xc5   :  { %v147_v6 = vpop.f32.mrf.mxu0  ;;  %v150_v7 = vpop.f32.mrf.mxu1 }
  0xc6   :  { %v111_v8 = vadd.f32 %v147_v6, %v133_v5  ;;  %v121_v9 = vadd.f32 %v150_v7, %v133_v5 }
  0xc7   :  { %v105_v10 = vpop.f32.mrf.mxu0  ;;  %v115_v11 = vpop.f32.mrf.mxu1 }
  0xc8   :  { %126 = vst.msk [vmem:[%s206_s3 + $0x8] sm:$0xff] %vm124_vm1, %v111_v8  ;;  %128 = vst.msk [vmem:[%s206_s3 + $0x18] sm:$0xff] %vm124_vm1, %v121_v9  ;;  %v106_v12 = vadd.f32 %v133_v5, %v105_v10  ;;  %v116_v13 = vadd.f32 %v133_v5, %v115_v11 }
  0xca   :  { %125 = vst.msk [vmem:[%s206_s3] sm:$0xff] %vm124_vm1, %v106_v12  ;;  %127 = vst.msk [vmem:[%s206_s3 + $0x10] sm:$0xff] %vm124_vm1, %v116_v13 }

// kernel: mgtn_forward.40
= control target key start
LH: loop header
LB: loop body
LE: loop exit
PB: predicated region body
PF: predicated region fallthrough
CT: control target
= control target key end

     0   :  { %11 = vsyncpa [#allocation3], 0  ;;  %s993_s0 = inlined_call_operand.vmem [shape: f32[8,16,8], index: 0, kind: input, shape index: {}]   ;;  %s994_s1 = inlined_call_operand.vmem [shape: f32[8,16,8], index: 1, kind: input, shape index: {}]   ;;  %s995_s2 = inlined_call_operand.vmem [shape: f32[8,16,8], index: 2, kind: input, shape index: {}]   ;;  %s996_s3 = inlined_call_operand.vmem [shape: f32[8,16,16], index: 3, kind: input, shape index: {}]   ;;  %s997_s4 = inlined_call_operand.vmem [shape: f32[8,16,8], index: 4, kind: output, shape index: {0}]   ;;  %s998_s5 = inlined_call_operand.hbm [shape: f32[8,16,16], index: 5, kind: output, shape index: {1}]  }
   0x1   :  { %13 = vsyncpa [#allocation3 + $0x1], 0  ;;  %s847_s18 = smov 0   ;;  %s849_s19 = smov 0  }
   0x2   :  { %s851_s20 = smov 0   ;;  %s853_s21 = smov 0  }
   0x3 LB: > { %s868_s22 = sadd.s32 4294967295, %s812_s21   ;;  %s649_s23 = sadd.s32 4294967294, %s812_s21   ;;  %s812_s21 = sphi %s853_s21, %s1004_s21   ;;  %s808_s20 = sphi %s851_s20, %s1003_s20   ;;  %s804_s19 = sphi %s849_s19, %s1002_s19   ;;  %s800_s18 = sphi %s847_s18, %s1001_s18  }
   0x4   : > { %s872_s24 = sadd.s32 1, %s812_s21   ;;  %s156_s25 = sadd.s32 1, %s808_s20 }
   0x5   : > { %s153_s26 = ssub.s32 %s812_s21, %s872_s24  ;;  %p166_p0 = scmp.ne.s32.totalorder %s808_s20, %s804_s19 }
   0x6   : > { %p154_p1 = scmp.eq.s32.totalorder %s153_s26, 0  ;;  %p167_p2 = scmp.eq.s32.totalorder %s868_s22, 7 }
   0x7   : > { %p172_p3 = scmp.ne.s32.totalorder %s804_s19, %s800_s18  ;;  %p173_p4 = scmp.eq.s32.totalorder %s649_s23, 7 }
   0x8   : > { %s883_s27 = scalar_select %p154_p1, %s808_s20, %s156_s25  }
   0x9   : > { %p885_p5 = por %p167_p2, %p166_p0  ;;  %p889_p6 = por %p173_p4, %p172_p3 }
   0xa   : > { %p652_p7 = scmp.ge.s32.totalorder %s812_s21, 1  ;;  %p223_p8 = scmp.lt.s32.totalorder %s812_s21, 9 }
   0xc   : > { %p224_p9 = pnand %p652_p7, %p223_p8 }
   0xd   : > { %p271_p10 = scmp.lt.s32.totalorder (!%p224_p9), %s868_s22, 7  ;;  %s268_s13 = sand.u32 (!%p224_p9), 1, %s804_s19  }
   0xe   : > { %227 = sbr.rel (%p224_p9) target bundleno = 743 (0x2e7), region = 36  ;;  %s653_s14 = sshll.u32 (!%p224_p9), %s268_s13, 4 }
   0xf   : > { %s920_s23 = scalar_lea.vmem (!%p224_p9), [#allocation2], %s653_s14  ;;  %s680_s8 = sshll.u32 (!%p224_p9), %s868_s22, 8 }
  0x10   : > { %s526_s7 = sshll.u32 (!%p224_p9), %s920_s23, 4  ;;  %s943_s11 = scalar_lea.hbm (!%p224_p9), %s998_s5, %s680_s8  ;;  %s937_s7 = int_to_ptr.vmem [resolvable:$true] %s526_s7 }
  0x11   : > { %s752_s14 = scalar_lea.vmem (!%p224_p9), %s937_s7, 256  ;;  %s814_s15 = smov (!%p224_p9), [#allocation2]  }
  0x12   : > { %p753_p11 = scmp.ne.s32.totalorder (!%p224_p9), %s937_s7, %s752_s14  ;;  %s756_s16 = sshll.u32 (!%p224_p9), %s814_s15, 4  ;;  %s757_s16 = int_to_ptr.vmem [resolvable:$false] %s756_s16 }
  0x13   : > { %s272_s30 = scalar_select %p271_p10, %s868_s22, 7  ;;  %vm300_vm0 = vcmask 64512   ;;  %vm390_vm1 = vcmask 130048  }
  0x14   : > { %p754_p12 = pnand %p753_p11, %p885_p5  ;;  %p759_p0 = scmp.lt.s32.totalorder %s937_s7, %s757_s16 }
  0x15   : > { %s897_s6 = sshll.u32 %s272_s30, 4 }
  0x16   : > { %s280_s9 = scalar_lea.vmem %s994_s1, %s897_s6  ;;  %s275_s12 = scalar_lea.vmem %s993_s0, %s897_s6 }
  0x17   : > { %v298_v0 = vld [vmem:[%s280_s9] sm:$0xff]  ;;  %v299_v1 = vld [vmem:[%s280_s9 + $0x8] sm:$0xff]  ;;  %s290_s17 = scalar_lea.vmem %s996_s3, %s897_s6  ;;  %s285_s30 = scalar_lea.vmem %s995_s2, %s897_s6 }
  0x18   : > { %v296_v2 = vld [vmem:[%s275_s12] sm:$0xff]  ;;  %689 = vmatprep.subr.msk.mxu0 %vm300_vm0, %v299_v1  ;;  %v297_v3 = vld [vmem:[%s275_s12 + $0x8] sm:$0xff]  ;;  %s947_s12 = scalar_lea.sflag [#allocation3], %s268_s13  ;;  %p755_p13 = pneg %p754_p12 }
  0x19   : > { %693 = vmatprep.mubr.msk.f32.mxu0 %vm300_vm0, %v296_v2  ;;  %690 = vmatpush3.xpose.msk.msra.mxu0 %vm300_vm0, %v299_v1  ;;  %v393_v7 = vld [vmem:[%s290_s17] sm:$0xff]  ;;  %v394_v9 = vld [vmem:[%s290_s17 + $0x8] sm:$0xff]  ;;  %s758_s17 = scalar_lea.vmem %s757_s16, 512 }
  0x1a   : > { %691 = vmatprep.subr.msk.mxu0 %vm300_vm0, %v298_v0  ;;  %v420_v24 = vld [vmem:[%s285_s30 + $0x8] sm:$0xff]  ;;  %v419_v25 = vld [vmem:[%s285_s30] sm:$0xff]  ;;  %p760_p1 = scmp.lt.s32.totalorder %s758_s17, %s752_s14 }
  0x1b   : > { %696 = vmatprep.subr.mxu1 %v420_v24 }
  0x1c   : > { %697 = vmatpush3.msra.mxu1 %v420_v24  ;;  %p761_p2 = por %p760_p1, %p759_p0 }
  0x1d   : > { %692 = vmatpush3.xpose.msk.msra.mxu0 %vm300_vm0, %v298_v0  ;;  %698 = vmatprep.subr.mxu1 %v419_v25 }
  0x1e   : > { %699 = vmatpush3.msra.mxu1 %v419_v25  ;;  %p762_p3 = pnand %p761_p2, %p755_p13 }
  0x20   : > { %694 = vmatmul.mubr.msk.f32.vlgmr.msra.gmra.mxu0 %vm300_vm0, %v297_v3 }
  0xe0   : > { %v695_v4 = vpop.f32.mrf.mxu0 }
  0xe1   : > { %v389_v5 = vmul.f32 0.35355338, %v695_v4 }
  0xe2   : > { %v379_v6 = vpop.f32.mrf.mxu0 }
  0xe3   : > { %392 = vst.msk [vmem:[%s920_s23 + $0x8] sm:$0xff] %vm390_vm1, %v389_v5  ;;  %v388_v8 = vmul.f32 0.35355338, %v379_v6  ;;  %v396_v12 = vadd.f32 %v394_v9, %v389_v5 }
  0xe5   : > { %391 = vst.msk [vmem:[%s920_s23] sm:$0xff] %vm390_vm1, %v388_v8  ;;  %v395_v10 = vadd.f32 %v393_v7, %v388_v8  ;;  %v400_v13 = vsel %vm390_vm1, %v396_v12, -inf }
  0xe7   : > { %v397_v11 = vsel %vm390_vm1, %v395_v10, -inf }
  0xe8   : > { %398 = vmax.xlane.f32.xlu0 %v397_v11 }
  0xec   : > { %401 = vmax.xlane.f32.xlu0 %v400_v13 }
 0x171   : > { %v399_v14 = vpop.xlane.xlu0 %398 }
 0x172   : > { %v403_v15 = vsub.f32 %v395_v10, %v399_v14 }
 0x174   : > { %v405_v16 = vmul.f32 1.442695, %v403_v15 }
 0x175   : > { %v402_v17 = vpop.xlane.xlu0 %401 }
 0x176   : > { %744 = vpow2.f32 %v405_v16  ;;  %v404_v18 = vsub.f32 %v396_v12, %v402_v17 }
 0x178   : > { %v407_v19 = vmul.f32 1.442695, %v404_v18 }
 0x17a   : > { %746 = vpow2.f32 %v407_v19 }
 0x183   : > { %v745_v20 = vpop.eup %744 }
 0x184   : > { %v409_v21 = vsel %vm390_vm1, %v745_v20, 0.0 }
 0x185   : > { %410 = vadd.xlane.f32.xlu1 %v409_v21 }
 0x187   : > { %v747_v22 = vpop.eup %746 }
 0x188   : > { %v412_v23 = vsel %vm390_vm1, %v747_v22, 0.0 }
 0x189   : > { %413 = vadd.xlane.f32.xlu1 %v412_v23 }
 0x20e   : > { %v411_v26 = vpop.xlane.xlu1 %410 }
 0x20f   : > { %748 = vrcp.f32 %v411_v26 }
 0x212   : > { %v414_v27 = vpop.xlane.xlu1 %413 }
 0x213   : > { %750 = vrcp.f32 %v414_v27 }
 0x21c   : > { %v749_v28 = vpop.eup %748 }
 0x21d   : > { %v416_v29 = vmul.f32 %v749_v28, %v745_v20 }
 0x21f   : > { %700 = vmatprep.mubr.msk.f32.mxu1 %vm390_vm1, %v416_v29 }
 0x220   : > { %v751_v30 = vpop.eup %750 }
 0x221   : > { %v418_v31 = vmul.f32 %v751_v30, %v747_v22 }
 0x223   : > { %701 = vmatmul.mubr.msk.f32.vlgmr.msra.gmra.mxu1 %vm390_vm1, %v418_v31 }
 0x224   : > { %765 = shalt.err (!%p762_p3)
}
 0x225   : > { %s766_s22 = scalar_lea.hbm %s943_s11, 256  ;;  %s770_s25 = scalar_lea.hbm %s998_s5, 2048 }
 0x226   : > { %p767_p4 = scmp.ne.s32.totalorder %s943_s11, %s766_s22  ;;  %p771_p9 = scmp.lt.s32.totalorder %s943_s11, %s998_s5 }
 0x227   : > { %p772_p10 = scmp.lt.s32.totalorder %s770_s25, %s766_s22 }
 0x228   : > { %p768_p7 = pnand %p767_p4, %p885_p5 }
 0x229   : > { %p773_p11 = por %p772_p10, %p771_p9 }
 0x22a   : > { %p769_p8 = pneg %p768_p7 }
 0x22c   : > { %p774_p12 = pnand %p773_p11, %p769_p8 }
 0x22e   : > { %777 = shalt.err (!%p774_p12)
}
 0x22f   : > { %s815_s8 = smov 128   ;;  %s816_s9 = smov 8  }
 0x230   : > { %703 = dma.vmem_to_hbm [thread:$0]  (%p885_p5), %s937_s7, 256, %s943_s11, %s947_s12, %s815_s8, %s815_s8, %s816_s9  }
 0x231   : > { %s295_s15 = scalar_lea.vmem %s997_s4, %s897_s6 }
 0x2e3   : > { %v702_v32 = vpop.f32.mrf.mxu1 }
 0x2e4   : > { %503 = vst.msk [vmem:[%s295_s15 + $0x8] sm:$0xff] %vm300_vm0, %v702_v32 }
 0x2e5   : > { %v493_v33 = vpop.f32.mrf.mxu1 }
 0x2e6   : > { %502 = vst.msk [vmem:[%s295_s15] sm:$0xff] %vm300_vm0, %v493_v33 }
 0x2e7 PF: > { %p709_p13 = scmp.ge.s32.totalorder %s812_s21, 2  ;;  %s549_s16 = sand.u32 1, %s800_s18  }
 0x2e8   : > { %s550_s28 = scalar_lea.sflag [#allocation3], %s549_s16 }
 0x2e9   : > { %p706_p0 = pnand %p709_p13, %p889_p6 }
 0x2eb   : > { %p707_p1 = pneg %p706_p0 }
 0x2ed   : > { %795 = dma.done.wait (%p707_p1), %s550_s28, 256  }
 0x2ee   : > { %797 = vsyncadd (%p707_p1), %s550_s28, 4294967040  ;;  %p16_p5 = scmp.ge.s32.totalorder %s872_s24, 10   ;;  %s1001_s18 = smov %s804_s19 }
 0x2ef   : > { %s1002_s19 = smov %s808_s20  ;;  %s1003_s20 = smov %s883_s27 }
 0x2f0   : > { %s1004_s21 = smov %s872_s24  ;;  %18 = sbr.rel (!%p16_p5) target bundleno = 3 (0x3), region = 92 }
 0x2f5   :  { %555 = vsyncpa [#allocation3], 1 }
 0x2f6   :  { %557 = vsyncpa [#allocation3 + $0x1], 1 }

// kernel: mgtn_forward.42
= control target key start
LH: loop header
LB: loop body
LE: loop exit
PB: predicated region body
PF: predicated region fallthrough
CT: control target
= control target key end

     0   :  { %vm29_vm0 = vcmask 261120   ;;  %s202_s0 = inlined_call_operand.vmem [shape: f32[32,32], index: 0, kind: input, shape index: {}]   ;;  %s203_s1 = inlined_call_operand.vmem [shape: f32[32,32], index: 1, kind: input, shape index: {}]   ;;  %s204_s2 = inlined_call_operand.vmem [shape: f32[1,32], index: 2, kind: input, shape index: {}]   ;;  %s205_s3 = inlined_call_operand.vmem [shape: f32[1,32], index: 3, kind: input, shape index: {}]   ;;  %s206_s4 = inlined_call_operand.vmem [shape: f32[32,32], index: 4, kind: output, shape index: {}]  }
   0x1   :  { %v17_v0 = vld [vmem:[%s202_s0] sm:$0xff]  ;;  %v19_v2 = vld [vmem:[%s202_s0 + $0x10] sm:$0xff]  ;;  %v18_v5 = vld [vmem:[%s202_s0 + $0x8] sm:$0xff] }
   0x2   :  { %v21_v1 = vld [vmem:[%s203_s1] sm:$0xff]  ;;  %v23_v4 = vld [vmem:[%s203_s1 + $0x10] sm:$0xff]  ;;  %v22_v6 = vld [vmem:[%s203_s1 + $0x8] sm:$0xff] }
   0x3   :  { %v25_v3 = vadd.f32 %v21_v1, %v17_v0  ;;  %v27_v7 = vadd.f32 %v23_v4, %v19_v2  ;;  %v26_v8 = vadd.f32 %v22_v6, %v18_v5  ;;  %v20_v9 = vld [vmem:[%s202_s0 + $0x18] sm:$0xff]  ;;  %v113_v49 = vld [vmem:[%s204_s2] ss:$0 sm:$0xff] }
   0x4   :  { %v24_v10 = vld [vmem:[%s203_s1 + $0x18] sm:$0xff]  ;;  %v114_v51 = vld [vmem:[%s205_s3] ss:$0 sm:$0xff] }
   0x5   :  { %v30_v11 = vsel %vm29_vm0, %v25_v3, 0.0  ;;  %v28_v12 = vadd.f32 %v24_v10, %v20_v9  ;;  %v36_v13 = vsel %vm29_vm0, %v27_v7, 0.0  ;;  %v33_v14 = vsel %vm29_vm0, %v26_v8, 0.0 }
   0x6   :  { %31 = vadd.xlane.f32.xlu0 %v30_v11  ;;  %37 = vadd.xlane.f32.xlu1 %v36_v13 }
   0x7   :  { %v39_v15 = vsel %vm29_vm0, %v28_v12, 0.0 }
   0xa   :  { %34 = vadd.xlane.f32.xlu0 %v33_v14  ;;  %40 = vadd.xlane.f32.xlu1 %v39_v15 }
  0x8f   :  { %v32_v16 = vpop.xlane.xlu0 %31  ;;  %v38_v18 = vpop.xlane.xlu1 %37 }
  0x90   :  { %v43_v17 = vmul.f32 0.03125, %v32_v16  ;;  %v45_v19 = vmul.f32 0.03125, %v38_v18 }
  0x92   :  { %v47_v20 = vsub.f32 %v25_v3, %v43_v17  ;;  %v49_v21 = vsub.f32 %v27_v7, %v45_v19 }
  0x93   :  { %v35_v22 = vpop.xlane.xlu0 %34  ;;  %v41_v24 = vpop.xlane.xlu1 %40 }
  0x94   :  { %v44_v23 = vmul.f32 0.03125, %v35_v22  ;;  %v51_v25 = vmul.f32 %v47_v20, %v47_v20  ;;  %v46_v26 = vmul.f32 0.03125, %v41_v24  ;;  %v53_v27 = vmul.f32 %v49_v21, %v49_v21 }
  0x96   :  { %v48_v28 = vsub.f32 %v26_v8, %v44_v23  ;;  %v55_v29 = vsel %vm29_vm0, %v51_v25, 0.0  ;;  %v50_v30 = vsub.f32 %v28_v12, %v46_v26  ;;  %v61_v31 = vsel %vm29_vm0, %v53_v27, 0.0 }
  0x97   :  { %56 = vadd.xlane.f32.xlu0 %v55_v29 }
  0x98   :  { %v52_v32 = vmul.f32 %v48_v28, %v48_v28  ;;  %v54_v33 = vmul.f32 %v50_v30, %v50_v30 }
  0x9a   :  { %v58_v34 = vsel %vm29_vm0, %v52_v32, 0.0  ;;  %v64_v35 = vsel %vm29_vm0, %v54_v33, 0.0 }
  0x9b   :  { %62 = vadd.xlane.f32.xlu0 %v61_v31  ;;  %59 = vadd.xlane.f32.xlu1 %v58_v34 }
  0x9f   :  { %65 = vadd.xlane.f32.xlu1 %v64_v35 }
 0x120   :  { %v57_v36 = vpop.xlane.xlu0 %56 }
 0x121   :  { %v67_v37 = vmul.f32 0.03125, %v57_v36 }
 0x123   :  { %v71_v38 = vadd.f32 1e-05, %v67_v37 }
 0x124   :  { %v60_v39 = vpop.xlane.xlu1 %59  ;;  %v63_v40 = vpop.xlane.xlu0 %62 }
 0x125   :  { %115 = vrsqrt.f32 %v71_v38  ;;  %v68_v41 = vmul.f32 0.03125, %v60_v39  ;;  %v69_v42 = vmul.f32 0.03125, %v63_v40 }
 0x127   :  { %v72_v43 = vadd.f32 1e-05, %v68_v41  ;;  %v73_v44 = vadd.f32 1e-05, %v69_v42 }
 0x128   :  { %v66_v45 = vpop.xlane.xlu1 %65 }
 0x129   :  { %117 = vrsqrt.f32 %v72_v43  ;;  %v70_v46 = vmul.f32 0.03125, %v66_v45 }
 0x12a   :  { %119 = vrsqrt.f32 %v73_v44 }
 0x12b   :  { %v74_v47 = vadd.f32 1e-05, %v70_v46 }
 0x12d   :  { %121 = vrsqrt.f32 %v74_v47 }
 0x132   :  { %v116_v48 = vpop.eup %115 }
 0x133   :  { %v79_v50 = vmul.f32 %v116_v48, %v47_v20 }
 0x135   :  { %v90_v52 = vmul.f32 %v113_v49, %v79_v50 }
 0x136   :  { %v118_v53 = vpop.eup %117 }
 0x137   :  { %v120_v54 = vpop.eup %119  ;;  %v101_v55 = vadd.f32 %v114_v51, %v90_v52  ;;  %v80_v56 = vmul.f32 %v118_v53, %v48_v28 }
 0x138   :  { %v81_v57 = vmul.f32 %v120_v54, %v49_v21 }
 0x139   :  { %105 = vst.msk [vmem:[%s206_s4] sm:$0xff] %vm29_vm0, %v101_v55  ;;  %v91_v58 = vmul.f32 %v113_v49, %v80_v56 }
 0x13a   :  { %v122_v59 = vpop.eup %121  ;;  %v92_v60 = vmul.f32 %v113_v49, %v81_v57 }
 0x13b   :  { %v102_v61 = vadd.f32 %v114_v51, %v91_v58  ;;  %v82_v62 = vmul.f32 %v122_v59, %v50_v30 }
 0x13c   :  { %v103_v63 = vadd.f32 %v114_v51, %v92_v60 }
 0x13d   :  { %106 = vst.msk [vmem:[%s206_s4 + $0x8] sm:$0xff] %vm29_vm0, %v102_v61  ;;  %v93_v0 = vmul.f32 %v113_v49, %v82_v62 }
 0x13e   :  { %107 = vst.msk [vmem:[%s206_s4 + $0x10] sm:$0xff] %vm29_vm0, %v103_v63 }
 0x13f   :  { %v104_v1 = vadd.f32 %v114_v51, %v93_v0 }
 0x141   :  { %108 = vst.msk [vmem:[%s206_s4 + $0x18] sm:$0xff] %vm29_vm0, %v104_v1 }

// kernel: mgtn_forward.53
= control target key start
LH: loop header
LB: loop body
LE: loop exit
PB: predicated region body
PF: predicated region fallthrough
CT: control target
= control target key end

     0   :  { %vm25_vm0 = vcmask 130048   ;;  %vm107_vm1 = vcmask 261120   ;;  %s169_s1 = inlined_call_operand.vmem [shape: f32[16,32], index: 1, kind: input, shape index: {}]   ;;  %s170_s0 = inlined_call_operand.vmem [shape: f32[16,16], index: 0, kind: input, shape index: {}]   ;;  %s171_s2 = inlined_call_operand.vmem [shape: f32[1,32], index: 2, kind: input, shape index: {}]   ;;  %s172_s3 = inlined_call_operand.vmem [shape: f32[16,32], index: 3, kind: output, shape index: {}]  }
   0x1   :  { %v17_v0 = vld [vmem:[%s169_s1 + $0x8] sm:$0xff]  ;;  %v16_v1 = vld [vmem:[%s169_s1] sm:$0xff] }
   0x2   :  { %v14_v2 = vld [vmem:[%s170_s0] sm:$0xff]  ;;  %121 = vmatprep.subr.mxu0 %v17_v0  ;;  %v15_v3 = vld [vmem:[%s170_s0 + $0x8] sm:$0xff] }
   0x3   :  { %125 = vmatprep.mubr.msk.f32.mxu0 %vm25_vm0, %v14_v2  ;;  %122 = vmatpush3.msra.mxu0 %v17_v0  ;;  %v114_v4 = vld [vmem:[%s171_s2] ss:$0 sm:$0xff] }
   0x4   :  { %123 = vmatprep.subr.mxu0 %v16_v1 }
   0x5   :  { %124 = vmatpush3.msra.mxu0 %v16_v1 }
   0x6   :  { %126 = vmatmul.mubr.msk.f32.vlgmr.msra.gmra.mxu0 %vm25_vm0, %v15_v3 }
  0xc6   :  { %v127_v5 = vpop.f32.mrf.mxu0 }
  0xc7   :  { %v104_v6 = vadd.f32 %v127_v5, %v114_v4 }
  0xc8   :  { %v98_v7 = vpop.f32.mrf.mxu0 }
  0xc9   :  { %109 = vst.msk [vmem:[%s172_s3 + $0x8] sm:$0xff] %vm107_vm1, %v104_v6  ;;  %v99_v8 = vadd.f32 %v114_v4, %v98_v7 }
  0xcb   :  { %108 = vst.msk [vmem:[%s172_s3] sm:$0xff] %vm107_vm1, %v99_v8 }

// kernel: mgtn_forward.43
= control target key start
LH: loop header
LB: loop body
LE: loop exit
PB: predicated region body
PF: predicated region fallthrough
CT: control target
= control target key end

     0   :  { %vm35_vm0 = vcmask 261120   ;;  %vm152_vm1 = vcmask 523264   ;;  %s428_s1 = inlined_call_operand.vmem [shape: f32[32,64], index: 1, kind: input, shape index: {}]   ;;  %s429_s0 = inlined_call_operand.vmem [shape: f32[32,32], index: 0, kind: input, shape index: {}]   ;;  %s430_s3 = inlined_call_operand.vmem [shape: f32[64,32], index: 3, kind: input, shape index: {}]   ;;  %s431_s2 = inlined_call_operand.vmem [shape: f32[1,64], index: 2, kind: input, shape index: {}]   ;;  %s432_s4 = inlined_call_operand.vmem [shape: f32[1,32], index: 4, kind: input, shape index: {}]   ;;  %s433_s5 = inlined_call_operand.vmem [shape: f32[32,32], index: 5, kind: output, shape index: {}]  }
   0x1   :  { %v27_v0 = vld [vmem:[%s428_s1 + $0x18] sm:$0xff]  ;;  %v26_v1 = vld [vmem:[%s428_s1 + $0x10] sm:$0xff]  ;;  %v20_v2 = vld [vmem:[%s429_s0] sm:$0xff] }
   0x2   :  { %288 = vmatprep.subr.mxu0 %v27_v0  ;;  %v25_v3 = vld [vmem:[%s428_s1 + $0x8] sm:$0xff]  ;;  %296 = vmatprep.mubr.msk.f32.mxu0 %vm35_vm0, %v20_v2  ;;  %v144_v4 = vld [vmem:[%s430_s3 + $0x38] sm:$0xff]  ;;  %v143_v5 = vld [vmem:[%s430_s3 + $0x30] sm:$0xff] }
   0x3   :  { %289 = vmatpush3.msra.mxu0 %v27_v0  ;;  %302 = vmatprep.subr.mxu1 %v144_v4  ;;  %v24_v6 = vld [vmem:[%s428_s1] sm:$0xff]  ;;  %v142_v7 = vld [vmem:[%s430_s3 + $0x28] sm:$0xff]  ;;  %v22_v10 = vld [vmem:[%s429_s0 + $0x10] sm:$0xff] }
   0x4   :  { %290 = vmatprep.subr.mxu0 %v26_v1  ;;  %303 = vmatpush3.msra.mxu1 %v144_v4  ;;  %v21_v8 = vld [vmem:[%s429_s0 + $0x8] sm:$0xff]  ;;  %v141_v9 = vld [vmem:[%s430_s3 + $0x20] sm:$0xff]  ;;  %v23_v11 = vld [vmem:[%s429_s0 + $0x18] sm:$0xff] }
   0x5   :  { %291 = vmatpush3.msra.mxu0 %v26_v1  ;;  %304 = vmatprep.subr.mxu1 %v143_v5  ;;  %v140_v12 = vld [vmem:[%s430_s3 + $0x18] sm:$0xff]  ;;  %v139_v13 = vld [vmem:[%s430_s3 + $0x10] sm:$0xff]  ;;  %v138_v14 = vld [vmem:[%s430_s3 + $0x8] sm:$0xff] }
   0x6   :  { %292 = vmatprep.subr.mxu0 %v25_v3  ;;  %305 = vmatpush3.msra.mxu1 %v143_v5  ;;  %v137_v15 = vld [vmem:[%s430_s3] sm:$0xff] }
   0x7   :  { %293 = vmatpush3.msra.mxu0 %v25_v3  ;;  %306 = vmatprep.subr.mxu1 %v142_v7  ;;  %v258_v16 = vld [vmem:[%s431_s2] ss:$0 sm:$0xff] }
   0x8   :  { %294 = vmatprep.subr.mxu0 %v24_v6  ;;  %307 = vmatpush3.msra.mxu1 %v142_v7  ;;  %v263_v29 = vld [vmem:[%s432_s4] ss:$0 sm:$0xff] }
   0x9   :  { %295 = vmatpush3.msra.mxu0 %v24_v6  ;;  %308 = vmatprep.subr.mxu1 %v141_v9 }
   0xa   :  { %297 = vmatmul.mubr.msk.f32.vlgmr.msra.gmra.mxu0 %vm35_vm0, %v21_v8  ;;  %309 = vmatpush3.msra.mxu1 %v141_v9 }
   0xb   :  { %299 = vmatprep.mubr.msk.f32.mxu0 %vm35_vm0, %v22_v10  ;;  %310 = vmatprep.subr.mxu1 %v140_v12 }
   0xc   :  { %311 = vmatpush3.msra.mxu1 %v140_v12 }
   0xd   :  { %312 = vmatprep.subr.mxu1 %v139_v13 }
   0xe   :  { %300 = vmatmul.mubr.msk.f32.gmra.mxu0 %vm35_vm0, %v23_v11  ;;  %313 = vmatpush3.msra.mxu1 %v139_v13 }
   0xf   :  { %314 = vmatprep.subr.mxu1 %v138_v14 }
  0x10   :  { %315 = vmatpush3.msra.mxu1 %v138_v14 }
  0x11   :  { %316 = vmatprep.subr.mxu1 %v137_v15 }
  0x12   :  { %317 = vmatpush3.msra.mxu1 %v137_v15 }
  0xca   :  { %v298_v17 = vpop.f32.mrf.mxu0 }
  0xcb   :  { %v120_v18 = vadd.f32 %v298_v17, %v258_v16 }
  0xcc   :  { %v114_v19 = vpop.f32.mrf.mxu0 }
  0xcd   :  { %v115_v20 = vadd.f32 %v258_v16, %v114_v19  ;;  %v134_v23 = vmax.f32 %v120_v18, 0.0 }
  0xce   :  { %v301_v21 = vpop.f32.mrf.mxu0 }
  0xcf   :  { %v133_v22 = vmax.f32 %v115_v20, 0.0  ;;  %v130_v24 = vadd.f32 %v301_v21, %v258_v16 }
  0xd0   :  { %v124_v25 = vpop.f32.mrf.mxu0 }
  0xd1   :  { %v125_v26 = vadd.f32 %v258_v16, %v124_v25  ;;  %318 = vmatprep.mubr.msk.f32.mxu1 %vm152_vm1, %v133_v22  ;;  %v136_v28 = vmax.f32 %v130_v24, 0.0 }
  0xd2   :  { %319 = vmatmul.mubr.msk.f32.vlgmr.msra.gmra.mxu1 %vm152_vm1, %v134_v23 }
  0xd3   :  { %v135_v27 = vmax.f32 %v125_v26, 0.0 }
  0xd5   :  { %321 = vmatprep.mubr.msk.f32.mxu1 %vm152_vm1, %v135_v27 }
  0xd6   :  { %322 = vmatmul.mubr.msk.f32.gmra.mxu1 %vm152_vm1, %v136_v28 }
 0x192   :  { %v320_v30 = vpop.f32.mrf.mxu1 }
 0x193   :  { %v237_v31 = vadd.f32 %v320_v30, %v263_v29 }
 0x194   :  { %v231_v32 = vpop.f32.mrf.mxu1 }
 0x195   :  { %251 = vst.msk [vmem:[%s433_s5 + $0x8] sm:$0xff] %vm35_vm0, %v237_v31  ;;  %v232_v33 = vadd.f32 %v263_v29, %v231_v32 }
 0x196   :  { %v323_v34 = vpop.f32.mrf.mxu1 }
 0x197   :  { %250 = vst.msk [vmem:[%s433_s5] sm:$0xff] %vm35_vm0, %v232_v33  ;;  %v247_v35 = vadd.f32 %v323_v34, %v263_v29 }
 0x198   :  { %v241_v36 = vpop.f32.mrf.mxu1 }
 0x199   :  { %253 = vst.msk [vmem:[%s433_s5 + $0x18] sm:$0xff] %vm35_vm0, %v247_v35  ;;  %v242_v37 = vadd.f32 %v263_v29, %v241_v36 }
 0x19b   :  { %252 = vst.msk [vmem:[%s433_s5 + $0x10] sm:$0xff] %vm35_vm0, %v242_v37 }

// kernel: mgtn_forward.54
= control target key start
LH: loop header
LB: loop body
LE: loop exit
PB: predicated region body
PF: predicated region fallthrough
CT: control target
= control target key end

     0   :  { %vm27_vm0 = vcmask 261120   ;;  %s186_s1 = inlined_call_operand.vmem [shape: f32[32,32], index: 1, kind: input, shape index: {}]   ;;  %s187_s0 = inlined_call_operand.vmem [shape: f32[16,32], index: 0, kind: input, shape index: {}]   ;;  %s188_s2 = inlined_call_operand.vmem [shape: f32[1,32], index: 2, kind: input, shape index: {}]   ;;  %s189_s3 = inlined_call_operand.vmem [shape: f32[16,32], index: 3, kind: output, shape index: {}]  }
   0x1   :  { %v19_v0 = vld [vmem:[%s186_s1 + $0x18] sm:$0xff]  ;;  %v18_v1 = vld [vmem:[%s186_s1 + $0x10] sm:$0xff]  ;;  %v14_v2 = vld [vmem:[%s187_s0] sm:$0xff] }
   0x2   :  { %124 = vmatprep.subr.mxu0 %v19_v0  ;;  %v17_v3 = vld [vmem:[%s186_s1 + $0x8] sm:$0xff]  ;;  %132 = vmatprep.mubr.msk.f32.mxu0 %vm27_vm0, %v14_v2  ;;  %v16_v4 = vld [vmem:[%s186_s1] sm:$0xff] }
   0x3   :  { %125 = vmatpush3.msra.mxu0 %v19_v0  ;;  %v15_v5 = vld [vmem:[%s187_s0 + $0x8] sm:$0xff]  ;;  %v115_v6 = vld [vmem:[%s188_s2] ss:$0 sm:$0xff] }
   0x4   :  { %126 = vmatprep.subr.mxu0 %v18_v1 }
   0x5   :  { %127 = vmatpush3.msra.mxu0 %v18_v1 }
   0x6   :  { %128 = vmatprep.subr.mxu0 %v17_v3 }
   0x7   :  { %129 = vmatpush3.msra.mxu0 %v17_v3 }
   0x8   :  { %130 = vmatprep.subr.mxu0 %v16_v4 }
   0x9   :  { %131 = vmatpush3.msra.mxu0 %v16_v4 }
   0xa   :  { %133 = vmatmul.mubr.msk.f32.vlgmr.msra.gmra.mxu0 %vm27_vm0, %v15_v5 }
  0xca   :  { %v134_v7 = vpop.f32.mrf.mxu0 }
  0xcb   :  { %v106_v8 = vadd.f32 %v134_v7, %v115_v6 }
  0xcc   :  { %v100_v9 = vpop.f32.mrf.mxu0 }
  0xcd   :  { %110 = vst.msk [vmem:[%s189_s3 + $0x8] sm:$0xff] %vm27_vm0, %v106_v8  ;;  %v101_v10 = vadd.f32 %v115_v6, %v100_v9 }
  0xcf   :  { %109 = vst.msk [vmem:[%s189_s3] sm:$0xff] %vm27_vm0, %v101_v10 }

// kernel: mgtn_forward.57
= control target key start
LH: loop header
LB: loop body
LE: loop exit
PB: predicated region body
PF: predicated region fallthrough
CT: control target
= control target key end

     0   :  { %11 = vsyncpa [#allocation3], 0  ;;  %s879_s0 = inlined_call_operand.vmem [shape: f32[8,8,8], index: 0, kind: input, shape index: {}]   ;;  %s880_s1 = inlined_call_operand.vmem [shape: f32[8,8,8], index: 1, kind: input, shape index: {}]   ;;  %s881_s2 = inlined_call_operand.vmem [shape: f32[8,8,8], index: 2, kind: input, shape index: {}]   ;;  %s882_s3 = inlined_call_operand.vmem [shape: f32[8,8,8], index: 3, kind: input, shape index: {}]   ;;  %s883_s4 = inlined_call_operand.vmem [shape: f32[8,8,8], index: 4, kind: output, shape index: {0}]   ;;  %s884_s5 = inlined_call_operand.hbm [shape: f32[8,8,8], index: 5, kind: output, shape index: {1}]  }
   0x1   :  { %13 = vsyncpa [#allocation3 + $0x1], 0  ;;  %s762_s18 = smov 0   ;;  %s764_s19 = smov 0  }
   0x2   :  { %s766_s20 = smov 0   ;;  %s768_s21 = smov 0  }
   0x3 LB: > { %s783_s22 = sadd.s32 4294967295, %s727_s21   ;;  %s591_s23 = sadd.s32 4294967294, %s727_s21   ;;  %s727_s21 = sphi %s768_s21, %s890_s21   ;;  %s723_s20 = sphi %s766_s20, %s889_s20   ;;  %s719_s19 = sphi %s764_s19, %s888_s19   ;;  %s715_s18 = sphi %s762_s18, %s887_s18  }
   0x4   : > { %s787_s24 = sadd.s32 1, %s727_s21   ;;  %s156_s25 = sadd.s32 1, %s723_s20 }
   0x5   : > { %s153_s26 = ssub.s32 %s727_s21, %s787_s24  ;;  %p166_p0 = scmp.ne.s32.totalorder %s723_s20, %s719_s19 }
   0x6   : > { %p154_p1 = scmp.eq.s32.totalorder %s153_s26, 0  ;;  %p167_p2 = scmp.eq.s32.totalorder %s783_s22, 7 }
   0x7   : > { %p172_p3 = scmp.ne.s32.totalorder %s719_s19, %s715_s18  ;;  %p173_p4 = scmp.eq.s32.totalorder %s591_s23, 7 }
   0x8   : > { %s798_s27 = scalar_select %p154_p1, %s723_s20, %s156_s25  }
   0x9   : > { %p800_p5 = por %p167_p2, %p166_p0  ;;  %p804_p6 = por %p173_p4, %p172_p3 }
   0xa   : > { %p594_p7 = scmp.ge.s32.totalorder %s727_s21, 1  ;;  %p219_p8 = scmp.lt.s32.totalorder %s727_s21, 9 }
   0xc   : > { %p220_p9 = pnand %p594_p7, %p219_p8 }
   0xd   : > { %p262_p10 = scmp.lt.s32.totalorder (!%p220_p9), %s783_s22, 7  ;;  %s259_s13 = sand.u32 (!%p220_p9), 1, %s719_s19  }
   0xe   : > { %223 = sbr.rel (%p220_p9) target bundleno = 731 (0x2db), region = 36  ;;  %s595_s17 = sshll.u32 (!%p220_p9), %s259_s13, 3 }
   0xf   : > { %s261_s23 = scalar_lea.vmem (!%p220_p9), [#allocation2], %s595_s17  ;;  %s605_s7 = sshll.u32 (!%p220_p9), %s783_s22, 7 }
  0x10   : > { %s472_s8 = sshll.u32 (!%p220_p9), %s261_s23, 4  ;;  %s470_s11 = scalar_lea.hbm (!%p220_p9), %s884_s5, %s605_s7  ;;  %s473_s8 = int_to_ptr.vmem [resolvable:$true] %s472_s8 }
  0x11   : > { %s667_s14 = scalar_lea.vmem (!%p220_p9), %s473_s8, 128  ;;  %s731_s15 = smov (!%p220_p9), [#allocation2]  }
  0x12   : > { %p668_p11 = scmp.ne.s32.totalorder (!%p220_p9), %s473_s8, %s667_s14 }
  0x13   : > { %v729_v0 = vmov 0.0   ;;  %vm730_vm0 = vmmov 0   ;;  %s263_s30 = scalar_select %p262_p10, %s783_s22, 7  ;;  %vm284_vm1 = vcmask 64512  }
  0x14   : > { %612 = vmatprep.subr.mxu0 %v729_v0  ;;  %614 = vmatprep.mubr.msk.f32.mxu0 %vm730_vm0, %v729_v0  ;;  %p669_p12 = pnand %p668_p11, %p800_p5 }
  0x15   : > { %617 = vmatprep.subr.mxu1 %v729_v0  ;;  %619 = vmatprep.mubr.msk.f32.mxu1 %vm730_vm0, %v729_v0  ;;  %s812_s6 = sshll.u32 %s263_s30, 3 }
  0x16   : > { %s269_s9 = scalar_lea.vmem %s880_s1, %s812_s6  ;;  %s265_s12 = scalar_lea.vmem %s879_s0, %s812_s6 }
  0x17   : > { %v283_v1 = vld [vmem:[%s269_s9] sm:$0xff]  ;;  %s277_s16 = scalar_lea.vmem %s882_s3, %s812_s6  ;;  %s273_s30 = scalar_lea.vmem %s881_s2, %s812_s6 }
  0x18   : > { %613 = vmatpush3.xpose.msk.msra.mxu0 %vm284_vm1, %v283_v1  ;;  %v282_v2 = vld [vmem:[%s265_s12] sm:$0xff]  ;;  %s456_s12 = scalar_lea.sflag [#allocation3], %s259_s13  ;;  %p670_p13 = pneg %p669_p12 }
  0x19   : > { %v363_v4 = vld [vmem:[%s277_s16] sm:$0xff]  ;;  %s671_s16 = sshll.u32 %s731_s15, 4  ;;  %s672_s16 = int_to_ptr.vmem [resolvable:$false] %s671_s16 }
  0x1a   : > { %v376_v14 = vld [vmem:[%s273_s30] sm:$0xff]  ;;  %s673_s17 = scalar_lea.vmem %s672_s16, 256  ;;  %p674_p0 = scmp.lt.s32.totalorder %s473_s8, %s672_s16 }
  0x1b   : > { %615 = vmatmul.mubr.msk.f32.vlgmr.msra.gmra.mxu0 %vm284_vm1, %v282_v2  ;;  %618 = vmatpush3.msra.mxu1 %v376_v14  ;;  %p675_p1 = scmp.lt.s32.totalorder %s673_s17, %s667_s14 }
  0x1d   : > { %p676_p2 = por %p675_p1, %p674_p0 }
  0x1f   : > { %p677_p3 = pnand %p676_p2, %p670_p13 }
  0xdb   : > { %v357_v3 = vpop.f32.mrf.mxu0 }
  0xdc   : > { %v361_v5 = vmul.f32 0.35355338, %v357_v3 }
  0xdd   : > { %v616_v6 = vpop.f32.mrf.mxu0 }
  0xde   : > { %v364_v7 = vadd.f32 %v363_v4, %v361_v5  ;;  %362 = vst.msk [vmem:[%s261_s23] sm:$0xff] %vm284_vm1, %v361_v5 }
  0xe0   : > { %v365_v8 = vsel %vm284_vm1, %v364_v7, -inf }
  0xe1   : > { %366 = vmax.xlane.f32.xlu0 %v365_v8 }
 0x16a   : > { %v367_v9 = vpop.xlane.xlu0 %366 }
 0x16b   : > { %v368_v10 = vsub.f32 %v364_v7, %v367_v9 }
 0x16d   : > { %v369_v11 = vmul.f32 1.442695, %v368_v10 }
 0x16f   : > { %663 = vpow2.f32 %v369_v11 }
 0x17c   : > { %v664_v12 = vpop.eup %663 }
 0x17d   : > { %v371_v13 = vsel %vm284_vm1, %v664_v12, 0.0 }
 0x17e   : > { %372 = vadd.xlane.f32.xlu0 %v371_v13 }
 0x207   : > { %v373_v15 = vpop.xlane.xlu0 %372 }
 0x208   : > { %665 = vrcp.f32 %v373_v15 }
 0x215   : > { %v666_v16 = vpop.eup %665 }
 0x216   : > { %v375_v17 = vmul.f32 %v666_v16, %v664_v12 }
 0x218   : > { %620 = vmatmul.mubr.msk.f32.vlgmr.msra.gmra.mxu1 %vm284_vm1, %v375_v17 }
 0x219   : > { %680 = shalt.err (!%p677_p3)
}
 0x21a   : > { %s681_s22 = scalar_lea.hbm %s470_s11, 128  ;;  %s685_s25 = scalar_lea.hbm %s884_s5, 1024 }
 0x21b   : > { %p682_p4 = scmp.ne.s32.totalorder %s470_s11, %s681_s22  ;;  %p686_p9 = scmp.lt.s32.totalorder %s470_s11, %s884_s5 }
 0x21c   : > { %p687_p10 = scmp.lt.s32.totalorder %s685_s25, %s681_s22 }
 0x21d   : > { %p683_p7 = pnand %p682_p4, %p800_p5 }
 0x21e   : > { %p688_p11 = por %p687_p10, %p686_p9 }
 0x21f   : > { %p684_p8 = pneg %p683_p7 }
 0x221   : > { %p689_p12 = pnand %p688_p11, %p684_p8 }
 0x223   : > { %692 = shalt.err (!%p689_p12)
}
 0x224   : > { %622 = dma.vmem_to_hbm [thread:$0]  (%p800_p5), %s473_s8, 128, %s470_s11, %s456_s12  }
 0x225   : > { %s281_s10 = scalar_lea.vmem %s883_s4, %s812_s6 }
 0x2d8   : > { %v446_v18 = vpop.f32.mrf.mxu1 }
 0x2d9   : > { %450 = vst.msk [vmem:[%s281_s10] sm:$0xff] %vm284_vm1, %v446_v18 }
 0x2da   : > { %v621_v19 = vpop.f32.mrf.mxu1 }
 0x2db PF: > { %p628_p13 = scmp.ge.s32.totalorder %s727_s21, 2  ;;  %s491_s14 = sand.u32 1, %s715_s18  }
 0x2dc   : > { %s492_s28 = scalar_lea.sflag [#allocation3], %s491_s14 }
 0x2dd   : > { %p625_p0 = pnand %p628_p13, %p804_p6 }
 0x2df   : > { %p626_p1 = pneg %p625_p0 }
 0x2e1   : > { %710 = dma.done.wait (%p626_p1), %s492_s28, 128  }
 0x2e2   : > { %712 = vsyncadd (%p626_p1), %s492_s28, 4294967168  ;;  %p16_p5 = scmp.ge.s32.totalorder %s787_s24, 10   ;;  %s887_s18 = smov %s719_s19 }
 0x2e3   : > { %s888_s19 = smov %s723_s20  ;;  %s889_s20 = smov %s798_s27 }
 0x2e4   : > { %s890_s21 = smov %s787_s24  ;;  %18 = sbr.rel (!%p16_p5) target bundleno = 3 (0x3), region = 92 }
 0x2e9   :  { %497 = vsyncpa [#allocation3], 1 }
 0x2ea   :  { %499 = vsyncpa [#allocation3 + $0x1], 1 }

// kernel: mgtn_forward.60
= control target key start
LH: loop header
LB: loop body
LE: loop exit
PB: predicated region body
PF: predicated region fallthrough
CT: control target
= control target key end

     0   :  { %vm33_vm0 = vcmask 261120   ;;  %vm132_vm1 = vcmask 523264   ;;  %s360_s1 = inlined_call_operand.vmem [shape: f32[32,64], index: 1, kind: input, shape index: {}]   ;;  %s361_s0 = inlined_call_operand.vmem [shape: f32[16,32], index: 0, kind: input, shape index: {}]   ;;  %s362_s3 = inlined_call_operand.vmem [shape: f32[64,32], index: 3, kind: input, shape index: {}]   ;;  %s363_s2 = inlined_call_operand.vmem [shape: f32[1,64], index: 2, kind: input, shape index: {}]   ;;  %s364_s4 = inlined_call_operand.vmem [shape: f32[1,32], index: 4, kind: input, shape index: {}]   ;;  %s365_s5 = inlined_call_operand.vmem [shape: f32[16,32], index: 5, kind: output, shape index: {}]  }
   0x1   :  { %v25_v0 = vld [vmem:[%s360_s1 + $0x18] sm:$0xff]  ;;  %v24_v1 = vld [vmem:[%s360_s1 + $0x10] sm:$0xff]  ;;  %v20_v2 = vld [vmem:[%s361_s0] sm:$0xff] }
   0x2   :  { %242 = vmatprep.subr.mxu0 %v25_v0  ;;  %v23_v3 = vld [vmem:[%s360_s1 + $0x8] sm:$0xff]  ;;  %250 = vmatprep.mubr.msk.f32.mxu0 %vm33_vm0, %v20_v2  ;;  %v124_v4 = vld [vmem:[%s362_s3 + $0x38] sm:$0xff]  ;;  %v123_v5 = vld [vmem:[%s362_s3 + $0x30] sm:$0xff] }
   0x3   :  { %243 = vmatpush3.msra.mxu0 %v25_v0  ;;  %253 = vmatprep.subr.mxu1 %v124_v4  ;;  %v22_v6 = vld [vmem:[%s360_s1] sm:$0xff]  ;;  %v122_v7 = vld [vmem:[%s362_s3 + $0x28] sm:$0xff]  ;;  %v120_v10 = vld [vmem:[%s362_s3 + $0x18] sm:$0xff] }
   0x4   :  { %244 = vmatprep.subr.mxu0 %v24_v1  ;;  %254 = vmatpush3.msra.mxu1 %v124_v4  ;;  %v21_v8 = vld [vmem:[%s361_s0 + $0x8] sm:$0xff]  ;;  %v121_v9 = vld [vmem:[%s362_s3 + $0x20] sm:$0xff]  ;;  %v119_v11 = vld [vmem:[%s362_s3 + $0x10] sm:$0xff] }
   0x5   :  { %245 = vmatpush3.msra.mxu0 %v24_v1  ;;  %255 = vmatprep.subr.mxu1 %v123_v5  ;;  %v118_v12 = vld [vmem:[%s362_s3 + $0x8] sm:$0xff]  ;;  %v117_v13 = vld [vmem:[%s362_s3] sm:$0xff] }
   0x6   :  { %246 = vmatprep.subr.mxu0 %v23_v3  ;;  %256 = vmatpush3.msra.mxu1 %v123_v5  ;;  %v220_v14 = vld [vmem:[%s363_s2] ss:$0 sm:$0xff] }
   0x7   :  { %247 = vmatpush3.msra.mxu0 %v23_v3  ;;  %257 = vmatprep.subr.mxu1 %v122_v7  ;;  %v223_v21 = vld [vmem:[%s364_s4] ss:$0 sm:$0xff] }
   0x8   :  { %248 = vmatprep.subr.mxu0 %v22_v6  ;;  %258 = vmatpush3.msra.mxu1 %v122_v7 }
   0x9   :  { %249 = vmatpush3.msra.mxu0 %v22_v6  ;;  %259 = vmatprep.subr.mxu1 %v121_v9 }
   0xa   :  { %251 = vmatmul.mubr.msk.f32.vlgmr.msra.gmra.mxu0 %vm33_vm0, %v21_v8  ;;  %260 = vmatpush3.msra.mxu1 %v121_v9 }
   0xb   :  { %261 = vmatprep.subr.mxu1 %v120_v10 }
   0xc   :  { %262 = vmatpush3.msra.mxu1 %v120_v10 }
   0xd   :  { %263 = vmatprep.subr.mxu1 %v119_v11 }
   0xe   :  { %264 = vmatpush3.msra.mxu1 %v119_v11 }
   0xf   :  { %265 = vmatprep.subr.mxu1 %v118_v12 }
  0x10   :  { %266 = vmatpush3.msra.mxu1 %v118_v12 }
  0x11   :  { %267 = vmatprep.subr.mxu1 %v117_v13 }
  0x12   :  { %268 = vmatpush3.msra.mxu1 %v117_v13 }
  0xca   :  { %v252_v15 = vpop.f32.mrf.mxu0 }
  0xcb   :  { %v112_v16 = vadd.f32 %v252_v15, %v220_v14 }
  0xcc   :  { %v106_v17 = vpop.f32.mrf.mxu0 }
  0xcd   :  { %v107_v18 = vadd.f32 %v220_v14, %v106_v17  ;;  %v116_v20 = vmax.f32 %v112_v16, 0.0 }
  0xcf   :  { %v115_v19 = vmax.f32 %v107_v18, 0.0 }
  0xd1   :  { %269 = vmatprep.mubr.msk.f32.mxu1 %vm132_vm1, %v115_v19 }
  0xd2   :  { %270 = vmatmul.mubr.msk.f32.vlgmr.msra.gmra.mxu1 %vm132_vm1, %v116_v20 }
 0x192   :  { %v271_v22 = vpop.f32.mrf.mxu1 }
 0x193   :  { %v211_v23 = vadd.f32 %v271_v22, %v223_v21 }
 0x194   :  { %v205_v24 = vpop.f32.mrf.mxu1 }
 0x195   :  { %215 = vst.msk [vmem:[%s365_s5 + $0x8] sm:$0xff] %vm33_vm0, %v211_v23  ;;  %v206_v25 = vadd.f32 %v223_v21, %v205_v24 }
 0x197   :  { %214 = vst.msk [vmem:[%s365_s5] sm:$0xff] %vm33_vm0, %v206_v25 }

// kernel: mgtn_forward.59
= control target key start
LH: loop header
LB: loop body
LE: loop exit
PB: predicated region body
PF: predicated region fallthrough
CT: control target
= control target key end

     0   :  { %vm23_vm0 = vcmask 261120   ;;  %s136_s0 = inlined_call_operand.vmem [shape: f32[16,32], index: 0, kind: input, shape index: {}]   ;;  %s137_s1 = inlined_call_operand.vmem [shape: f32[16,32], index: 1, kind: input, shape index: {}]   ;;  %s138_s2 = inlined_call_operand.vmem [shape: f32[1,32], index: 2, kind: input, shape index: {}]   ;;  %s139_s3 = inlined_call_operand.vmem [shape: f32[1,32], index: 3, kind: input, shape index: {}]   ;;  %s140_s4 = inlined_call_operand.vmem [shape: f32[16,32], index: 4, kind: output, shape index: {}]  }
   0x1   :  { %v17_v0 = vld [vmem:[%s136_s0] sm:$0xff]  ;;  %v18_v2 = vld [vmem:[%s136_s0 + $0x8] sm:$0xff] }
   0x2   :  { %v19_v1 = vld [vmem:[%s137_s1] sm:$0xff]  ;;  %v20_v4 = vld [vmem:[%s137_s1 + $0x8] sm:$0xff] }
   0x3   :  { %v21_v3 = vadd.f32 %v19_v1, %v17_v0  ;;  %v22_v5 = vadd.f32 %v20_v4, %v18_v2  ;;  %v75_v25 = vld [vmem:[%s138_s2] ss:$0 sm:$0xff] }
   0x4   :  { %v76_v27 = vld [vmem:[%s139_s3] ss:$0 sm:$0xff] }
   0x5   :  { %v24_v6 = vsel %vm23_vm0, %v21_v3, 0.0  ;;  %v27_v7 = vsel %vm23_vm0, %v22_v5, 0.0 }
   0x6   :  { %25 = vadd.xlane.f32.xlu0 %v24_v6 }
   0xa   :  { %28 = vadd.xlane.f32.xlu0 %v27_v7 }
  0x8f   :  { %v26_v8 = vpop.xlane.xlu0 %25 }
  0x90   :  { %v31_v9 = vmul.f32 0.03125, %v26_v8 }
  0x92   :  { %v33_v10 = vsub.f32 %v21_v3, %v31_v9 }
  0x93   :  { %v29_v11 = vpop.xlane.xlu0 %28 }
  0x94   :  { %v32_v12 = vmul.f32 0.03125, %v29_v11  ;;  %v35_v13 = vmul.f32 %v33_v10, %v33_v10 }
  0x96   :  { %v34_v14 = vsub.f32 %v22_v5, %v32_v12  ;;  %v37_v15 = vsel %vm23_vm0, %v35_v13, 0.0 }
  0x97   :  { %38 = vadd.xlane.f32.xlu1 %v37_v15 }
  0x98   :  { %v36_v16 = vmul.f32 %v34_v14, %v34_v14 }
  0x9a   :  { %v40_v17 = vsel %vm23_vm0, %v36_v16, 0.0 }
  0x9b   :  { %41 = vadd.xlane.f32.xlu1 %v40_v17 }
 0x120   :  { %v39_v18 = vpop.xlane.xlu1 %38 }
 0x121   :  { %v43_v19 = vmul.f32 0.03125, %v39_v18 }
 0x123   :  { %v45_v20 = vadd.f32 1e-05, %v43_v19 }
 0x124   :  { %v42_v21 = vpop.xlane.xlu1 %41 }
 0x125   :  { %77 = vrsqrt.f32 %v45_v20  ;;  %v44_v22 = vmul.f32 0.03125, %v42_v21 }
 0x127   :  { %v46_v23 = vadd.f32 1e-05, %v44_v22 }
 0x129   :  { %79 = vrsqrt.f32 %v46_v23 }
 0x132   :  { %v78_v24 = vpop.eup %77 }
 0x133   :  { %v49_v26 = vmul.f32 %v78_v24, %v33_v10 }
 0x135   :  { %v58_v28 = vmul.f32 %v75_v25, %v49_v26 }
 0x136   :  { %v80_v29 = vpop.eup %79 }
 0x137   :  { %v67_v30 = vadd.f32 %v76_v27, %v58_v28  ;;  %v50_v31 = vmul.f32 %v80_v29, %v34_v14 }
 0x139   :  { %69 = vst.msk [vmem:[%s140_s4] sm:$0xff] %vm23_vm0, %v67_v30  ;;  %v59_v32 = vmul.f32 %v75_v25, %v50_v31 }
 0x13b   :  { %v68_v33 = vadd.f32 %v76_v27, %v59_v32 }
 0x13d   :  { %70 = vst.msk [vmem:[%s140_s4 + $0x8] sm:$0xff] %vm23_vm0, %v68_v33 }

// kernel: mgtn_forward.70
= control target key start
LH: loop header
LB: loop body
LE: loop exit
PB: predicated region body
PF: predicated region fallthrough
CT: control target
= control target key end

     0   :  { %v477_v27 = vmov 1983009808   ;;  %v125_v29 = vlaneseq  ;;  %vm362_vm0 = vcmask 9216   ;;  %s803_s1 = inlined_call_operand.vmem [shape: f32[768,2], index: 1, kind: input, shape index: {}]   ;;  %s804_s0 = inlined_call_operand.vmem [shape: f32[2,768], index: 0, kind: input, shape index: {}]   ;;  %s805_s2 = inlined_call_operand.vmem [shape: f32[1,2], index: 2, kind: input, shape index: {}]   ;;  %s806_s3 = inlined_call_operand.vmem [shape: f32[2,2], index: 3, kind: output, shape index: {}]  }
   0x1   :  { %v47_v0 = vld [vmem:[%s803_s1 + $0xf8] sm:$0xff]  ;;  %v46_v2 = vld [vmem:[%s803_s1 + $0xf0] sm:$0xff]  ;;  %v45_v6 = vld [vmem:[%s803_s1 + $0xe8] sm:$0xff]  ;;  %v123_v28 = vunpack.c.l.s4 %v477_v27 }
   0x2   :  { %v31_v1 = vld [vmem:[%s803_s1 + $0x78] sm:$0xff]  ;;  %370 = vmatprep.subr.mxu0 %v47_v0  ;;  %v30_v4 = vld [vmem:[%s803_s1 + $0x70] sm:$0xff]  ;;  %v29_v8 = vld [vmem:[%s803_s1 + $0x68] sm:$0xff]  ;;  %v126_v39 = vshrl.u32 %v125_v29, 7 }
   0x3   :  { %v79_v3 = vld [vmem:[%s803_s1 + $0x1f8] sm:$0xff]  ;;  %371 = vmatpush3.msra.mxu0 %v31_v1  ;;  %v78_v7 = vld [vmem:[%s803_s1 + $0x1f0] sm:$0xff]  ;;  %v77_v10 = vld [vmem:[%s803_s1 + $0x1e8] sm:$0xff]  ;;  %v124_v38 = vunpack.c.0.s8 %v123_v28 }
   0x4   :  { %v63_v5 = vld [vmem:[%s803_s1 + $0x178] sm:$0xff]  ;;  %405 = vmatprep.subr.mxu1 %v79_v3  ;;  %372 = vmatprep.subr.mxu0 %v46_v2  ;;  %v62_v9 = vld [vmem:[%s803_s1 + $0x170] sm:$0xff]  ;;  %v44_v11 = vld [vmem:[%s803_s1 + $0xe0] sm:$0xff] }
   0x5   :  { %406 = vmatpush3.msra.mxu1 %v63_v5  ;;  %373 = vmatpush3.msra.mxu0 %v30_v4  ;;  %v61_v12 = vld [vmem:[%s803_s1 + $0x168] sm:$0xff]  ;;  %v28_v13 = vld [vmem:[%s803_s1 + $0x60] sm:$0xff]  ;;  %v43_v15 = vld [vmem:[%s803_s1 + $0xd8] sm:$0xff]  ;;  %v127_v48 = vsub.s32 %v124_v38, %v126_v39 }
   0x6   :  { %407 = vmatprep.subr.mxu1 %v78_v7  ;;  %374 = vmatprep.subr.mxu0 %v45_v6  ;;  %v76_v14 = vld [vmem:[%s803_s1 + $0x1e0] sm:$0xff]  ;;  %v27_v17 = vld [vmem:[%s803_s1 + $0x58] sm:$0xff]  ;;  %v42_v19 = vld [vmem:[%s803_s1 + $0xd0] sm:$0xff] }
   0x7   :  { %408 = vmatpush3.msra.mxu1 %v62_v9  ;;  %375 = vmatpush3.msra.mxu0 %v29_v8  ;;  %v60_v16 = vld [vmem:[%s803_s1 + $0x160] sm:$0xff]  ;;  %v75_v18 = vld [vmem:[%s803_s1 + $0x1d8] sm:$0xff]  ;;  %v26_v21 = vld [vmem:[%s803_s1 + $0x50] sm:$0xff] }
   0x8   :  { %409 = vmatprep.subr.mxu1 %v77_v10  ;;  %376 = vmatprep.subr.mxu0 %v44_v11  ;;  %v59_v20 = vld [vmem:[%s803_s1 + $0x158] sm:$0xff]  ;;  %v74_v22 = vld [vmem:[%s803_s1 + $0x1d0] sm:$0xff]  ;;  %v41_v23 = vld [vmem:[%s803_s1 + $0xc8] sm:$0xff] }
   0x9   :  { %410 = vmatpush3.msra.mxu1 %v61_v12  ;;  %377 = vmatpush3.msra.mxu0 %v28_v13  ;;  %v58_v24 = vld [vmem:[%s803_s1 + $0x150] sm:$0xff]  ;;  %v25_v25 = vld [vmem:[%s803_s1 + $0x48] sm:$0xff]  ;;  %v40_v30 = vld [vmem:[%s803_s1 + $0xc0] sm:$0xff] }
   0xa   :  { %411 = vmatprep.subr.mxu1 %v76_v14  ;;  %378 = vmatprep.subr.mxu0 %v43_v15  ;;  %v73_v26 = vld [vmem:[%s803_s1 + $0x1c8] sm:$0xff]  ;;  %v24_v32 = vld [vmem:[%s803_s1 + $0x40] sm:$0xff]  ;;  %v39_v34 = vld [vmem:[%s803_s1 + $0xb8] sm:$0xff] }
   0xb   :  { %412 = vmatpush3.msra.mxu1 %v60_v16  ;;  %379 = vmatpush3.msra.mxu0 %v27_v17  ;;  %v57_v31 = vld [vmem:[%s803_s1 + $0x148] sm:$0xff]  ;;  %v72_v33 = vld [vmem:[%s803_s1 + $0x1c0] sm:$0xff]  ;;  %v23_v36 = vld [vmem:[%s803_s1 + $0x38] sm:$0xff] }
   0xc   :  { %413 = vmatprep.subr.mxu1 %v75_v18  ;;  %380 = vmatprep.subr.mxu0 %v42_v19  ;;  %v56_v35 = vld [vmem:[%s803_s1 + $0x140] sm:$0xff]  ;;  %v71_v37 = vld [vmem:[%s803_s1 + $0x1b8] sm:$0xff]  ;;  %v38_v40 = vld [vmem:[%s803_s1 + $0xb0] sm:$0xff] }
   0xd   :  { %414 = vmatpush3.msra.mxu1 %v59_v20  ;;  %381 = vmatpush3.msra.mxu0 %v26_v21  ;;  %v55_v41 = vld [vmem:[%s803_s1 + $0x138] sm:$0xff]  ;;  %v22_v42 = vld [vmem:[%s803_s1 + $0x30] sm:$0xff]  ;;  %v37_v44 = vld [vmem:[%s803_s1 + $0xa8] sm:$0xff] }
   0xe   :  { %415 = vmatprep.subr.mxu1 %v74_v22  ;;  %382 = vmatprep.subr.mxu0 %v41_v23  ;;  %v70_v43 = vld [vmem:[%s803_s1 + $0x1b0] sm:$0xff]  ;;  %v21_v46 = vld [vmem:[%s803_s1 + $0x28] sm:$0xff]  ;;  %v36_v49 = vld [vmem:[%s803_s1 + $0xa0] sm:$0xff] }
   0xf   :  { %416 = vmatpush3.msra.mxu1 %v58_v24  ;;  %383 = vmatpush3.msra.mxu0 %v25_v25  ;;  %v54_v45 = vld [vmem:[%s803_s1 + $0x130] sm:$0xff]  ;;  %v69_v47 = vld [vmem:[%s803_s1 + $0x1a8] sm:$0xff]  ;;  %v14_v51 = vld [vmem:[%s804_s0] sm:$0xff] }
  0x10   :  { %417 = vmatprep.subr.mxu1 %v73_v26  ;;  %384 = vmatprep.subr.mxu0 %v40_v30  ;;  %v53_v50 = vld [vmem:[%s803_s1 + $0x128] sm:$0xff]  ;;  %v20_v52 = vld [vmem:[%s803_s1 + $0x20] sm:$0xff]  ;;  %v35_v54 = vld [vmem:[%s803_s1 + $0x98] sm:$0xff]  ;;  %v128_v58 = vrot.slane %v14_v51, %v127_v48  ;;  %v121_v59 = vcombine.high %v14_v51, %v14_v51 }
  0x11   :  { %418 = vmatpush3.msra.mxu1 %v57_v31  ;;  %385 = vmatpush3.msra.mxu0 %v24_v32  ;;  %v68_v53 = vld [vmem:[%s803_s1 + $0x1a0] sm:$0xff]  ;;  %v19_v56 = vld [vmem:[%s803_s1 + $0x18] sm:$0xff]  ;;  %v34_v60 = vld [vmem:[%s803_s1 + $0x90] sm:$0xff] }
  0x12   :  { %419 = vmatprep.subr.mxu1 %v72_v33  ;;  %386 = vmatprep.subr.mxu0 %v39_v34  ;;  %v52_v55 = vld [vmem:[%s803_s1 + $0x120] sm:$0xff]  ;;  %v67_v57 = vld [vmem:[%s803_s1 + $0x198] sm:$0xff]  ;;  %v18_v62 = vld [vmem:[%s803_s1 + $0x10] sm:$0xff]  ;;  %v136_v4 = vcombine.high %v128_v58, %v128_v58  ;;  %v135_v5 = vrot.slane %v121_v59, %v127_v48 }
  0x13   :  { %420 = vmatpush3.msra.mxu1 %v56_v35  ;;  %387 = vmatpush3.msra.mxu0 %v23_v36  ;;  %v51_v61 = vld [vmem:[%s803_s1 + $0x118] sm:$0xff]  ;;  %v66_v63 = vld [vmem:[%s803_s1 + $0x190] sm:$0xff]  ;;  %v33_v0 = vld [vmem:[%s803_s1 + $0x88] sm:$0xff] }
  0x14   :  { %421 = vmatprep.subr.mxu1 %v71_v37  ;;  %388 = vmatprep.subr.mxu0 %v38_v40  ;;  %v50_v1 = vld [vmem:[%s803_s1 + $0x110] sm:$0xff]  ;;  %v17_v2 = vld [vmem:[%s803_s1 + $0x8] sm:$0xff]  ;;  %v32_v6 = vld [vmem:[%s803_s1 + $0x80] sm:$0xff]  ;;  %v137_v12 = vcombine.high %v135_v5, %v135_v5 }
  0x15   :  { %422 = vmatpush3.msra.mxu1 %v55_v41  ;;  %389 = vmatpush3.msra.mxu0 %v22_v42  ;;  %v65_v3 = vld [vmem:[%s803_s1 + $0x188] sm:$0xff]  ;;  %v16_v7 = vld [vmem:[%s803_s1] sm:$0xff]  ;;  %v111_v10 = vld [vmem:[%s803_s1 + $0x2f8] sm:$0xff] }
  0x16   :  { %423 = vmatprep.subr.mxu1 %v70_v43  ;;  %390 = vmatprep.subr.mxu0 %v37_v44  ;;  %v49_v8 = vld [vmem:[%s803_s1 + $0x108] sm:$0xff]  ;;  %v64_v9 = vld [vmem:[%s803_s1 + $0x180] sm:$0xff]  ;;  %v95_v13 = vld [vmem:[%s803_s1 + $0x278] sm:$0xff] }
  0x17   :  { %424 = vmatpush3.msra.mxu1 %v54_v45  ;;  %391 = vmatpush3.msra.mxu0 %v21_v46  ;;  %v48_v11 = vld [vmem:[%s803_s1 + $0x100] sm:$0xff]  ;;  %v702_v14 = vld.sshfl [vmem:[%s804_s0 + $0x8] sm:$0x33 pattern:$0x76325410]  ;;  %v110_v15 = vld [vmem:[%s803_s1 + $0x2f0] sm:$0xff] }
  0x18   :  { %425 = vmatprep.subr.mxu1 %v69_v47  ;;  %392 = vmatprep.subr.mxu0 %v36_v49  ;;  %v145_v16 = vcombine.high %v702_v14, %v702_v14  ;;  %v94_v17 = vld [vmem:[%s803_s1 + $0x270] sm:$0xff]  ;;  %v109_v18 = vld [vmem:[%s803_s1 + $0x2e8] sm:$0xff]  ;;  %v108_v20 = vld [vmem:[%s803_s1 + $0x2e0] sm:$0xff] }
  0x19   :  { %426 = vmatpush3.msra.mxu1 %v53_v50  ;;  %393 = vmatpush3.msra.mxu0 %v20_v52  ;;  %v93_v19 = vld [vmem:[%s803_s1 + $0x268] sm:$0xff]  ;;  %v92_v21 = vld [vmem:[%s803_s1 + $0x260] sm:$0xff]  ;;  %v107_v22 = vld [vmem:[%s803_s1 + $0x2d8] sm:$0xff] }
  0x1a   :  { %427 = vmatprep.subr.mxu1 %v68_v53  ;;  %394 = vmatprep.subr.mxu0 %v35_v54  ;;  %v91_v23 = vld [vmem:[%s803_s1 + $0x258] sm:$0xff]  ;;  %v106_v24 = vld [vmem:[%s803_s1 + $0x2d0] sm:$0xff]  ;;  %v105_v26 = vld [vmem:[%s803_s1 + $0x2c8] sm:$0xff] }
  0x1b   :  { %428 = vmatpush3.msra.mxu1 %v52_v55  ;;  %395 = vmatpush3.msra.mxu0 %v19_v56  ;;  %v90_v25 = vld [vmem:[%s803_s1 + $0x250] sm:$0xff]  ;;  %v89_v27 = vld [vmem:[%s803_s1 + $0x248] sm:$0xff]  ;;  %v104_v28 = vld [vmem:[%s803_s1 + $0x2c0] sm:$0xff] }
  0x1c   :  { %429 = vmatprep.subr.mxu1 %v67_v57  ;;  %396 = vmatprep.subr.mxu0 %v34_v60  ;;  %v88_v29 = vld [vmem:[%s803_s1 + $0x240] sm:$0xff]  ;;  %v103_v30 = vld [vmem:[%s803_s1 + $0x2b8] sm:$0xff]  ;;  %v102_v32 = vld [vmem:[%s803_s1 + $0x2b0] sm:$0xff] }
  0x1d   :  { %430 = vmatpush3.msra.mxu1 %v51_v61  ;;  %397 = vmatpush3.msra.mxu0 %v18_v62  ;;  %v87_v31 = vld [vmem:[%s803_s1 + $0x238] sm:$0xff]  ;;  %v86_v33 = vld [vmem:[%s803_s1 + $0x230] sm:$0xff]  ;;  %v101_v34 = vld [vmem:[%s803_s1 + $0x2a8] sm:$0xff] }
  0x1e   :  { %431 = vmatprep.subr.mxu1 %v66_v63  ;;  %398 = vmatprep.subr.mxu0 %v33_v0  ;;  %v85_v35 = vld [vmem:[%s803_s1 + $0x228] sm:$0xff]  ;;  %v100_v36 = vld [vmem:[%s803_s1 + $0x2a0] sm:$0xff]  ;;  %v99_v38 = vld [vmem:[%s803_s1 + $0x298] sm:$0xff] }
  0x1f   :  { %432 = vmatpush3.msra.mxu1 %v50_v1  ;;  %399 = vmatpush3.msra.mxu0 %v17_v2  ;;  %v84_v37 = vld [vmem:[%s803_s1 + $0x220] sm:$0xff]  ;;  %v83_v39 = vld [vmem:[%s803_s1 + $0x218] sm:$0xff]  ;;  %v98_v40 = vld [vmem:[%s803_s1 + $0x290] sm:$0xff] }
  0x20   :  { %433 = vmatprep.subr.mxu1 %v65_v3  ;;  %400 = vmatprep.subr.mxu0 %v32_v6  ;;  %v82_v41 = vld [vmem:[%s803_s1 + $0x210] sm:$0xff]  ;;  %v97_v42 = vld [vmem:[%s803_s1 + $0x288] sm:$0xff]  ;;  %v96_v44 = vld [vmem:[%s803_s1 + $0x280] sm:$0xff] }
  0x21   :  { %216 = vmatprep.mubr.f32.mxu0 %v136_v4  ;;  %401 = vmatpush3.msra.mxu0 %v16_v7  ;;  %v81_v43 = vld [vmem:[%s803_s1 + $0x208] sm:$0xff]  ;;  %v80_v45 = vld [vmem:[%s803_s1 + $0x200] sm:$0xff] }
  0x22   :  { %434 = vmatpush3.msra.mxu1 %v49_v8  ;;  %217 = vmatmul.mubr.f32.vlgmr.msra.gmra.mxu0 %v128_v58  ;;  %v368_v50 = vld [vmem:[%s805_s2] ss:$0 sm:$0xff] }
  0x23   :  { %435 = vmatprep.subr.mxu1 %v64_v9  ;;  %440 = vmatprep.subr.mxu0 %v111_v10 }
  0x24   :  { %436 = vmatpush3.msra.mxu1 %v48_v11  ;;  %286 = vmatprep.mubr.f32.mxu1 %v137_v12 }
  0x25   :  { %441 = vmatpush3.msra.mxu0 %v95_v13  ;;  %287 = vmatmul.mubr.f32.vlgmr.msra.gmra.mxu1 %v135_v5 }
  0x26   :  { %442 = vmatprep.subr.mxu0 %v110_v15  ;;  %356 = vmatprep.mubr.f32.mxu0 %v145_v16 }
  0x27   :  { %443 = vmatpush3.msra.mxu0 %v94_v17 }
  0x28   :  { %444 = vmatprep.subr.mxu0 %v109_v18 }
  0x29   :  { %445 = vmatpush3.msra.mxu0 %v93_v19 }
  0x2a   :  { %446 = vmatprep.subr.mxu0 %v108_v20 }
  0x2b   :  { %447 = vmatpush3.msra.mxu0 %v92_v21 }
  0x2c   :  { %448 = vmatprep.subr.mxu0 %v107_v22 }
  0x2d   :  { %449 = vmatpush3.msra.mxu0 %v91_v23 }
  0x2e   :  { %450 = vmatprep.subr.mxu0 %v106_v24 }
  0x2f   :  { %451 = vmatpush3.msra.mxu0 %v90_v25 }
  0x30   :  { %452 = vmatprep.subr.mxu0 %v105_v26 }
  0x31   :  { %453 = vmatpush3.msra.mxu0 %v89_v27 }
  0x32   :  { %454 = vmatprep.subr.mxu0 %v104_v28 }
  0x33   :  { %455 = vmatpush3.msra.mxu0 %v88_v29 }
  0x34   :  { %456 = vmatprep.subr.mxu0 %v103_v30 }
  0x35   :  { %457 = vmatpush3.msra.mxu0 %v87_v31 }
  0x36   :  { %458 = vmatprep.subr.mxu0 %v102_v32 }
  0x37   :  { %459 = vmatpush3.msra.mxu0 %v86_v33 }
  0x38   :  { %460 = vmatprep.subr.mxu0 %v101_v34 }
  0x39   :  { %461 = vmatpush3.msra.mxu0 %v85_v35 }
  0x3a   :  { %462 = vmatprep.subr.mxu0 %v100_v36 }
  0x3b   :  { %463 = vmatpush3.msra.mxu0 %v84_v37 }
  0x3c   :  { %464 = vmatprep.subr.mxu0 %v99_v38 }
  0x3d   :  { %465 = vmatpush3.msra.mxu0 %v83_v39 }
  0x3e   :  { %466 = vmatprep.subr.mxu0 %v98_v40 }
  0x3f   :  { %467 = vmatpush3.msra.mxu0 %v82_v41 }
  0x40   :  { %468 = vmatprep.subr.mxu0 %v97_v42 }
  0x41   :  { %469 = vmatpush3.msra.mxu0 %v81_v43 }
  0x42   :  { %470 = vmatprep.subr.mxu0 %v96_v44 }
  0x43   :  { %471 = vmatpush3.msra.mxu0 %v80_v45 }
  0x44   :  { %357 = vmatmul.mubr.f32.vlgmr.msra.gmra.mxu0 %v702_v14 }
  0xe2   :  { %v402_v46 = vpop.f32.mrf.mxu0 }
  0xe4   :  { %v403_v47 = vpop.f32.mrf.mxu0 }
  0xe5   :  { %v437_v48 = vpop.f32.mrf.mxu1  ;;  %v404_v49 = vadd.f32 %v403_v47, %v402_v46 }
  0xe7   :  { %v438_v51 = vpop.f32.mrf.mxu1  ;;  %v219_v52 = vadd.f32 %v404_v49, %v368_v50 }
  0xe8   :  { %v439_v53 = vadd.f32 %v438_v51, %v437_v48 }
  0xea   :  { %v289_v56 = vadd.f32 %v439_v53, %v219_v52 }
 0x104   :  { %v472_v54 = vpop.f32.mrf.mxu0 }
 0x106   :  { %v473_v55 = vpop.f32.mrf.mxu0 }
 0x107   :  { %v474_v57 = vadd.f32 %v473_v55, %v472_v54 }
 0x109   :  { %v359_v58 = vadd.f32 %v474_v57, %v289_v56 }
 0x10b   :  { %363 = vst.msk [vmem:[%s806_s3] sm:$0x3] %vm362_vm0, %v359_v58 }

// kernel: mgtn_forward.71
= control target key start
LH: loop header
LB: loop body
LE: loop exit
PB: predicated region body
PF: predicated region fallthrough
CT: control target
= control target key end

     0   :  { %v511_v27 = vmov 1983009808   ;;  %v126_v29 = vlaneseq  ;;  %s838_s0 = inlined_call_operand.vmem [shape: f32[2,768], index: 0, kind: input, shape index: {}]   ;;  %s839_s1 = inlined_call_operand.vmem [shape: f32[768,4], index: 1, kind: input, shape index: {}]   ;;  %s840_s2 = inlined_call_operand.vmem [shape: f32[1,4], index: 2, kind: input, shape index: {}]   ;;  %s841_s3 = inlined_call_operand.hbm [shape: f32[2,4], index: 3, kind: output, shape index: {}]  }
   0x1   :  { %v48_v0 = vld [vmem:[%s839_s1 + $0xf8] sm:$0xff]  ;;  %v47_v2 = vld [vmem:[%s839_s1 + $0xf0] sm:$0xff]  ;;  %v46_v6 = vld [vmem:[%s839_s1 + $0xe8] sm:$0xff]  ;;  %v124_v28 = vunpack.c.l.s4 %v511_v27 }
   0x2   :  { %v32_v1 = vld [vmem:[%s839_s1 + $0x78] sm:$0xff]  ;;  %381 = vmatprep.subr.mxu0 %v48_v0  ;;  %v31_v4 = vld [vmem:[%s839_s1 + $0x70] sm:$0xff]  ;;  %v30_v8 = vld [vmem:[%s839_s1 + $0x68] sm:$0xff]  ;;  %v127_v39 = vshrl.u32 %v126_v29, 7 }
   0x3   :  { %v80_v3 = vld [vmem:[%s839_s1 + $0x1f8] sm:$0xff]  ;;  %382 = vmatpush3.msra.mxu0 %v32_v1  ;;  %v79_v7 = vld [vmem:[%s839_s1 + $0x1f0] sm:$0xff]  ;;  %v78_v10 = vld [vmem:[%s839_s1 + $0x1e8] sm:$0xff]  ;;  %v125_v38 = vunpack.c.0.s8 %v124_v28 }
   0x4   :  { %v64_v5 = vld [vmem:[%s839_s1 + $0x178] sm:$0xff]  ;;  %416 = vmatprep.subr.mxu1 %v80_v3  ;;  %383 = vmatprep.subr.mxu0 %v47_v2  ;;  %v63_v9 = vld [vmem:[%s839_s1 + $0x170] sm:$0xff]  ;;  %v45_v11 = vld [vmem:[%s839_s1 + $0xe0] sm:$0xff] }
   0x5   :  { %417 = vmatpush3.msra.mxu1 %v64_v5  ;;  %384 = vmatpush3.msra.mxu0 %v31_v4  ;;  %v62_v12 = vld [vmem:[%s839_s1 + $0x168] sm:$0xff]  ;;  %v29_v13 = vld [vmem:[%s839_s1 + $0x60] sm:$0xff]  ;;  %v44_v15 = vld [vmem:[%s839_s1 + $0xd8] sm:$0xff]  ;;  %v128_v48 = vsub.s32 %v125_v38, %v127_v39 }
   0x6   :  { %418 = vmatprep.subr.mxu1 %v79_v7  ;;  %385 = vmatprep.subr.mxu0 %v46_v6  ;;  %v77_v14 = vld [vmem:[%s839_s1 + $0x1e0] sm:$0xff]  ;;  %v28_v17 = vld [vmem:[%s839_s1 + $0x58] sm:$0xff]  ;;  %v43_v19 = vld [vmem:[%s839_s1 + $0xd0] sm:$0xff] }
   0x7   :  { %419 = vmatpush3.msra.mxu1 %v63_v9  ;;  %386 = vmatpush3.msra.mxu0 %v30_v8  ;;  %v61_v16 = vld [vmem:[%s839_s1 + $0x160] sm:$0xff]  ;;  %v76_v18 = vld [vmem:[%s839_s1 + $0x1d8] sm:$0xff]  ;;  %v27_v21 = vld [vmem:[%s839_s1 + $0x50] sm:$0xff] }
   0x8   :  { %420 = vmatprep.subr.mxu1 %v78_v10  ;;  %387 = vmatprep.subr.mxu0 %v45_v11  ;;  %v60_v20 = vld [vmem:[%s839_s1 + $0x158] sm:$0xff]  ;;  %v75_v22 = vld [vmem:[%s839_s1 + $0x1d0] sm:$0xff]  ;;  %v42_v23 = vld [vmem:[%s839_s1 + $0xc8] sm:$0xff] }
   0x9   :  { %421 = vmatpush3.msra.mxu1 %v62_v12  ;;  %388 = vmatpush3.msra.mxu0 %v29_v13  ;;  %v59_v24 = vld [vmem:[%s839_s1 + $0x150] sm:$0xff]  ;;  %v26_v25 = vld [vmem:[%s839_s1 + $0x48] sm:$0xff]  ;;  %v41_v30 = vld [vmem:[%s839_s1 + $0xc0] sm:$0xff] }
   0xa   :  { %422 = vmatprep.subr.mxu1 %v77_v14  ;;  %389 = vmatprep.subr.mxu0 %v44_v15  ;;  %v74_v26 = vld [vmem:[%s839_s1 + $0x1c8] sm:$0xff]  ;;  %v25_v32 = vld [vmem:[%s839_s1 + $0x40] sm:$0xff]  ;;  %v40_v34 = vld [vmem:[%s839_s1 + $0xb8] sm:$0xff] }
   0xb   :  { %423 = vmatpush3.msra.mxu1 %v61_v16  ;;  %390 = vmatpush3.msra.mxu0 %v28_v17  ;;  %v58_v31 = vld [vmem:[%s839_s1 + $0x148] sm:$0xff]  ;;  %v73_v33 = vld [vmem:[%s839_s1 + $0x1c0] sm:$0xff]  ;;  %v24_v36 = vld [vmem:[%s839_s1 + $0x38] sm:$0xff] }
   0xc   :  { %424 = vmatprep.subr.mxu1 %v76_v18  ;;  %391 = vmatprep.subr.mxu0 %v43_v19  ;;  %v57_v35 = vld [vmem:[%s839_s1 + $0x140] sm:$0xff]  ;;  %v72_v37 = vld [vmem:[%s839_s1 + $0x1b8] sm:$0xff]  ;;  %v39_v40 = vld [vmem:[%s839_s1 + $0xb0] sm:$0xff] }
   0xd   :  { %425 = vmatpush3.msra.mxu1 %v60_v20  ;;  %392 = vmatpush3.msra.mxu0 %v27_v21  ;;  %v56_v41 = vld [vmem:[%s839_s1 + $0x138] sm:$0xff]  ;;  %v23_v42 = vld [vmem:[%s839_s1 + $0x30] sm:$0xff]  ;;  %v38_v44 = vld [vmem:[%s839_s1 + $0xa8] sm:$0xff] }
   0xe   :  { %426 = vmatprep.subr.mxu1 %v75_v22  ;;  %393 = vmatprep.subr.mxu0 %v42_v23  ;;  %v71_v43 = vld [vmem:[%s839_s1 + $0x1b0] sm:$0xff]  ;;  %v22_v46 = vld [vmem:[%s839_s1 + $0x28] sm:$0xff]  ;;  %v37_v49 = vld [vmem:[%s839_s1 + $0xa0] sm:$0xff] }
   0xf   :  { %427 = vmatpush3.msra.mxu1 %v59_v24  ;;  %394 = vmatpush3.msra.mxu0 %v26_v25  ;;  %v55_v45 = vld [vmem:[%s839_s1 + $0x130] sm:$0xff]  ;;  %v70_v47 = vld [vmem:[%s839_s1 + $0x1a8] sm:$0xff]  ;;  %v15_v51 = vld [vmem:[%s838_s0] sm:$0xff] }
  0x10   :  { %428 = vmatprep.subr.mxu1 %v74_v26  ;;  %395 = vmatprep.subr.mxu0 %v41_v30  ;;  %v54_v50 = vld [vmem:[%s839_s1 + $0x128] sm:$0xff]  ;;  %v21_v52 = vld [vmem:[%s839_s1 + $0x20] sm:$0xff]  ;;  %v36_v54 = vld [vmem:[%s839_s1 + $0x98] sm:$0xff]  ;;  %v129_v58 = vrot.slane %v15_v51, %v128_v48  ;;  %v122_v59 = vcombine.high %v15_v51, %v15_v51 }
  0x11   :  { %429 = vmatpush3.msra.mxu1 %v58_v31  ;;  %396 = vmatpush3.msra.mxu0 %v25_v32  ;;  %v69_v53 = vld [vmem:[%s839_s1 + $0x1a0] sm:$0xff]  ;;  %v20_v56 = vld [vmem:[%s839_s1 + $0x18] sm:$0xff]  ;;  %v35_v60 = vld [vmem:[%s839_s1 + $0x90] sm:$0xff] }
  0x12   :  { %430 = vmatprep.subr.mxu1 %v73_v33  ;;  %397 = vmatprep.subr.mxu0 %v40_v34  ;;  %v53_v55 = vld [vmem:[%s839_s1 + $0x120] sm:$0xff]  ;;  %v68_v57 = vld [vmem:[%s839_s1 + $0x198] sm:$0xff]  ;;  %v19_v62 = vld [vmem:[%s839_s1 + $0x10] sm:$0xff]  ;;  %v137_v4 = vcombine.high %v129_v58, %v129_v58  ;;  %v136_v5 = vrot.slane %v122_v59, %v128_v48 }
  0x13   :  { %431 = vmatpush3.msra.mxu1 %v57_v35  ;;  %398 = vmatpush3.msra.mxu0 %v24_v36  ;;  %v52_v61 = vld [vmem:[%s839_s1 + $0x118] sm:$0xff]  ;;  %v67_v63 = vld [vmem:[%s839_s1 + $0x190] sm:$0xff]  ;;  %v34_v0 = vld [vmem:[%s839_s1 + $0x88] sm:$0xff] }
  0x14   :  { %432 = vmatprep.subr.mxu1 %v72_v37  ;;  %399 = vmatprep.subr.mxu0 %v39_v40  ;;  %v51_v1 = vld [vmem:[%s839_s1 + $0x110] sm:$0xff]  ;;  %v18_v2 = vld [vmem:[%s839_s1 + $0x8] sm:$0xff]  ;;  %v33_v6 = vld [vmem:[%s839_s1 + $0x80] sm:$0xff]  ;;  %v138_v12 = vcombine.high %v136_v5, %v136_v5 }
  0x15   :  { %433 = vmatpush3.msra.mxu1 %v56_v41  ;;  %400 = vmatpush3.msra.mxu0 %v23_v42  ;;  %v66_v3 = vld [vmem:[%s839_s1 + $0x188] sm:$0xff]  ;;  %v17_v7 = vld [vmem:[%s839_s1] sm:$0xff]  ;;  %v112_v10 = vld [vmem:[%s839_s1 + $0x2f8] sm:$0xff] }
  0x16   :  { %434 = vmatprep.subr.mxu1 %v71_v43  ;;  %401 = vmatprep.subr.mxu0 %v38_v44  ;;  %v50_v8 = vld [vmem:[%s839_s1 + $0x108] sm:$0xff]  ;;  %v65_v9 = vld [vmem:[%s839_s1 + $0x180] sm:$0xff]  ;;  %v96_v13 = vld [vmem:[%s839_s1 + $0x278] sm:$0xff] }
  0x17   :  { %435 = vmatpush3.msra.mxu1 %v55_v45  ;;  %402 = vmatpush3.msra.mxu0 %v22_v46  ;;  %v49_v11 = vld [vmem:[%s839_s1 + $0x100] sm:$0xff]  ;;  %v737_v14 = vld.sshfl [vmem:[%s838_s0 + $0x8] sm:$0x33 pattern:$0x76325410]  ;;  %v111_v15 = vld [vmem:[%s839_s1 + $0x2f0] sm:$0xff] }
  0x18   :  { %436 = vmatprep.subr.mxu1 %v70_v47  ;;  %403 = vmatprep.subr.mxu0 %v37_v49  ;;  %v146_v16 = vcombine.high %v737_v14, %v737_v14 }
  0x19   :  { %437 = vmatpush3.msra.mxu1 %v54_v50  ;;  %404 = vmatpush3.msra.mxu0 %v21_v52 }
  0x1a   :  { %438 = vmatprep.subr.mxu1 %v69_v53  ;;  %405 = vmatprep.subr.mxu0 %v36_v54 }
  0x1b   :  { %439 = vmatpush3.msra.mxu1 %v53_v55  ;;  %406 = vmatpush3.msra.mxu0 %v20_v56 }
  0x1c   :  { %440 = vmatprep.subr.mxu1 %v68_v57  ;;  %407 = vmatprep.subr.mxu0 %v35_v60 }
  0x1d   :  { %441 = vmatpush3.msra.mxu1 %v52_v61  ;;  %408 = vmatpush3.msra.mxu0 %v19_v62 }
  0x1e   :  { %442 = vmatprep.subr.mxu1 %v67_v63  ;;  %409 = vmatprep.subr.mxu0 %v34_v0 }
  0x1f   :  { %443 = vmatpush3.msra.mxu1 %v51_v1  ;;  %410 = vmatpush3.msra.mxu0 %v18_v2 }
  0x20   :  { %444 = vmatprep.subr.mxu1 %v66_v3  ;;  %411 = vmatprep.subr.mxu0 %v33_v6 }
  0x21   :  { %217 = vmatprep.mubr.f32.mxu0 %v137_v4  ;;  %412 = vmatpush3.msra.mxu0 %v17_v7 }
  0x22   :  { %445 = vmatpush3.msra.mxu1 %v50_v8  ;;  %218 = vmatmul.mubr.f32.vlgmr.msra.gmra.mxu0 %v129_v58 }
  0x23   :  { %446 = vmatprep.subr.mxu1 %v65_v9 }
  0x24   :  { %8 = vsyncpa [#allocation3], 0  ;;  %451 = vmatprep.subr.mxu0 %v112_v10  ;;  %447 = vmatpush3.msra.mxu1 %v49_v11  ;;  %v95_v17 = vld [vmem:[%s839_s1 + $0x270] sm:$0xff]  ;;  %v110_v18 = vld [vmem:[%s839_s1 + $0x2e8] sm:$0xff]  ;;  %s512_s18 = smov [#allocation2]   ;;  %vm363_vm0 = vcmask 25600  }
  0x25   :  { %287 = vmatprep.mubr.f32.mxu1 %v138_v12  ;;  %452 = vmatpush3.msra.mxu0 %v96_v13  ;;  %v94_v19 = vld [vmem:[%s839_s1 + $0x268] sm:$0xff]  ;;  %v109_v20 = vld [vmem:[%s839_s1 + $0x2e0] sm:$0xff]  ;;  %v108_v22 = vld [vmem:[%s839_s1 + $0x2d8] sm:$0xff] }
  0x26   :  { %288 = vmatmul.mubr.f32.vlgmr.msra.gmra.mxu1 %v136_v5  ;;  %453 = vmatprep.subr.mxu0 %v111_v15  ;;  %v93_v21 = vld [vmem:[%s839_s1 + $0x260] sm:$0xff]  ;;  %v92_v23 = vld [vmem:[%s839_s1 + $0x258] sm:$0xff]  ;;  %v107_v24 = vld [vmem:[%s839_s1 + $0x2d0] sm:$0xff] }
  0x27   :  { %454 = vmatpush3.msra.mxu0 %v95_v17  ;;  %357 = vmatprep.mubr.f32.mxu0 %v146_v16  ;;  %v91_v25 = vld [vmem:[%s839_s1 + $0x250] sm:$0xff]  ;;  %v106_v26 = vld [vmem:[%s839_s1 + $0x2c8] sm:$0xff]  ;;  %v105_v28 = vld [vmem:[%s839_s1 + $0x2c0] sm:$0xff] }
  0x28   :  { %455 = vmatprep.subr.mxu0 %v110_v18  ;;  %v90_v27 = vld [vmem:[%s839_s1 + $0x248] sm:$0xff]  ;;  %v89_v29 = vld [vmem:[%s839_s1 + $0x240] sm:$0xff]  ;;  %v104_v30 = vld [vmem:[%s839_s1 + $0x2b8] sm:$0xff] }
  0x29   :  { %456 = vmatpush3.msra.mxu0 %v94_v19  ;;  %v88_v31 = vld [vmem:[%s839_s1 + $0x238] sm:$0xff]  ;;  %v103_v32 = vld [vmem:[%s839_s1 + $0x2b0] sm:$0xff]  ;;  %v102_v34 = vld [vmem:[%s839_s1 + $0x2a8] sm:$0xff] }
  0x2a   :  { %457 = vmatprep.subr.mxu0 %v109_v20  ;;  %v87_v33 = vld [vmem:[%s839_s1 + $0x230] sm:$0xff]  ;;  %v86_v35 = vld [vmem:[%s839_s1 + $0x228] sm:$0xff]  ;;  %v101_v36 = vld [vmem:[%s839_s1 + $0x2a0] sm:$0xff] }
  0x2b   :  { %458 = vmatpush3.msra.mxu0 %v93_v21  ;;  %v85_v37 = vld [vmem:[%s839_s1 + $0x220] sm:$0xff]  ;;  %v100_v38 = vld [vmem:[%s839_s1 + $0x298] sm:$0xff]  ;;  %v99_v40 = vld [vmem:[%s839_s1 + $0x290] sm:$0xff] }
  0x2c   :  { %459 = vmatprep.subr.mxu0 %v108_v22  ;;  %v84_v39 = vld [vmem:[%s839_s1 + $0x218] sm:$0xff]  ;;  %v83_v41 = vld [vmem:[%s839_s1 + $0x210] sm:$0xff]  ;;  %v98_v42 = vld [vmem:[%s839_s1 + $0x288] sm:$0xff] }
  0x2d   :  { %460 = vmatpush3.msra.mxu0 %v92_v23  ;;  %v82_v43 = vld [vmem:[%s839_s1 + $0x208] sm:$0xff]  ;;  %v97_v44 = vld [vmem:[%s839_s1 + $0x280] sm:$0xff] }
  0x2e   :  { %461 = vmatprep.subr.mxu0 %v107_v24  ;;  %v81_v45 = vld [vmem:[%s839_s1 + $0x200] sm:$0xff]  ;;  %s371_s1 = sshll.u32 %s512_s18, 4  ;;  %s372_s1 = int_to_ptr.vmem [resolvable:$true] %s371_s1 }
  0x2f   :  { %462 = vmatpush3.msra.mxu0 %v91_v25  ;;  %v379_v50 = vld [vmem:[%s840_s2] ss:$0 sm:$0xff]  ;;  %s489_s19 = scalar_lea.vmem %s372_s1, 32  ;;  %p494_p1 = scmp.lt.s32.totalorder %s372_s1, %s372_s1 }
  0x30   :  { %463 = vmatprep.subr.mxu0 %v106_v26  ;;  %p490_p0 = scmp.ne.s32.totalorder %s372_s1, %s489_s19  ;;  %p495_p2 = scmp.lt.s32.totalorder %s489_s19, %s489_s19 }
  0x31   :  { %464 = vmatpush3.msra.mxu0 %v90_v27 }
  0x32   :  { %465 = vmatprep.subr.mxu0 %v105_v28  ;;  %p496_p3 = por %p495_p2, %p494_p1 }
  0x33   :  { %466 = vmatpush3.msra.mxu0 %v89_v29 }
  0x34   :  { %467 = vmatprep.subr.mxu0 %v104_v30  ;;  %p497_p4 = pnand %p496_p3, %p490_p0 }
  0x35   :  { %468 = vmatpush3.msra.mxu0 %v88_v31 }
  0x36   :  { %469 = vmatprep.subr.mxu0 %v103_v32 }
  0x37   :  { %470 = vmatpush3.msra.mxu0 %v87_v33 }
  0x38   :  { %471 = vmatprep.subr.mxu0 %v102_v34 }
  0x39   :  { %472 = vmatpush3.msra.mxu0 %v86_v35 }
  0x3a   :  { %473 = vmatprep.subr.mxu0 %v101_v36 }
  0x3b   :  { %474 = vmatpush3.msra.mxu0 %v85_v37 }
  0x3c   :  { %475 = vmatprep.subr.mxu0 %v100_v38 }
  0x3d   :  { %476 = vmatpush3.msra.mxu0 %v84_v39 }
  0x3e   :  { %477 = vmatprep.subr.mxu0 %v99_v40 }
  0x3f   :  { %478 = vmatpush3.msra.mxu0 %v83_v41 }
  0x40   :  { %479 = vmatprep.subr.mxu0 %v98_v42 }
  0x41   :  { %480 = vmatpush3.msra.mxu0 %v82_v43 }
  0x42   :  { %481 = vmatprep.subr.mxu0 %v97_v44 }
  0x43   :  { %482 = vmatpush3.msra.mxu0 %v81_v45 }
  0x44   :  { %358 = vmatmul.mubr.f32.vlgmr.msra.gmra.mxu0 %v737_v14 }
  0xe2   :  { %v413_v46 = vpop.f32.mrf.mxu0 }
  0xe4   :  { %v414_v47 = vpop.f32.mrf.mxu0 }
  0xe5   :  { %v415_v49 = vadd.f32 %v414_v47, %v413_v46 }
  0xe6   :  { %v448_v48 = vpop.f32.mrf.mxu1 }
  0xe7   :  { %v220_v52 = vadd.f32 %v415_v49, %v379_v50 }
  0xe8   :  { %v449_v51 = vpop.f32.mrf.mxu1 }
  0xe9   :  { %v450_v53 = vadd.f32 %v449_v51, %v448_v48 }
  0xeb   :  { %v290_v56 = vadd.f32 %v450_v53, %v220_v52 }
 0x104   :  { %v483_v54 = vpop.f32.mrf.mxu0 }
 0x106   :  { %v484_v55 = vpop.f32.mrf.mxu0 }
 0x107   :  { %v485_v57 = vadd.f32 %v484_v55, %v483_v54 }
 0x109   :  { %v360_v58 = vadd.f32 %v485_v57, %v290_v56 }
 0x10b   :  { %364 = vst.msk [vmem:[#allocation2] sm:$0x3] %vm363_vm0, %v360_v58 }
 0x10c   :  { %500 = shalt.err (!%p497_p4)
}
 0x10d   :  { %374 = dma.vmem_to_hbm [thread:$0]  %s372_s1, 32, %s841_s3, [#allocation3]  }
 0x10e   :  { %509 = dma.done.wait [#allocation3], 32  }
 0x10f   :  { %510 = vsyncadd [#allocation3], 4294967264 }
 0x110   :  { %378 = vsyncpa [#allocation3], 1 }

</bundles_post_ra>
